<compile_context>
chip_gen: v7x
topology: tpu7x:2x2x1
jax: 0.10.0
libtpu: 0.0.40
codegen_flags: <defaults>
</compile_context>

<pallas_src>
import math
import numpy as np
import jax
import jax.numpy as jnp
from jax.experimental import pallas as pl


# ----------------------------------------------------------------------------
# Fused encoder kernel (single pallas_call, no grid)
# ----------------------------------------------------------------------------

def _make_encoder_kernel(B, S, D, H, d_k, d_v, nlayers, inv_temp):
    HK = H * d_k  # column offset of K block / width of Q block in fused QKV

    def kernel(x_ref, wqkv_ref, wtanh_ref, fcw_ref, fcb_ref, lng_ref, lnb_ref,
               ffcw_ref, ffcb_ref, flng_ref, flnb_ref,
               out_ref, attn_ref, pre_ref):

        def layer_norm(y, g, b):
            mu = jnp.mean(y, axis=-1, keepdims=True)
            var = jnp.mean(jnp.square(y - mu), axis=-1, keepdims=True)
            return (y - mu) * jax.lax.rsqrt(var + 1e-5) * g + b

        # Per-batch (S, D) activation slabs; B is tiny so the loop is unrolled
        # and the LLO scheduler overlaps the independent batches/heads.
        x = [x_ref[b] for b in range(B)]
        original = list(x)
        pre_res = list(x)

        for l in range(nlayers):
            w_qkv = wqkv_ref[l]          # (D, 2*HK + H*d_v)
            fc_w = fcw_ref[l]            # (D, D)
            fc_b = fcb_ref[l]            # (1, D)
            ln_g = lng_ref[l]            # (1, D)
            ln_b = lnb_ref[l]            # (1, D)

            attn_last = jnp.zeros((S, S), jnp.float32)
            new_x = []
            new_pre = []
            for b in range(B):
                xb = x[b]                                            # (S, D)
                # fused Q|K|V projection (bias-free, one MXU pass)
                qkv = jnp.dot(xb, w_qkv, preferred_element_type=jnp.float32)

                fc_acc = None
                for h in range(H):
                    q = qkv[:, h * d_k:(h + 1) * d_k]                 # (S, d_k)
                    k = qkv[:, HK + h * d_k:HK + (h + 1) * d_k]       # (S, d_k)
                    v = qkv[:, 2 * HK + h * d_v:2 * HK + (h + 1) * d_v]

                    # scaled dot-product scores q @ k^T / sqrt(d_k)
                    s = jax.lax.dot_general(
                        q, k, (((1,), (1,)), ((), ())),
                        preferred_element_type=jnp.float32) * inv_temp
                    s = s - jnp.max(s, axis=-1, keepdims=True)
                    e = jnp.exp(s)
                    soft = e / jnp.sum(e, axis=-1, keepdims=True)

                    # learnt per-position re-weighting (tanh precomputed host-side)
                    a = wtanh_ref[l * H + h] * soft                   # (S, S)
                    if h == H - 1:   # only the last head's attention is consumed
                        attn_last = attn_last + a

                    o_h = jnp.dot(a, v, preferred_element_type=jnp.float32)
                    # head-concat folded into fc: concat(o_h) @ W == sum_h o_h @ W_rows
                    part = jnp.dot(o_h, fc_w[h * d_v:(h + 1) * d_v, :],
                                   preferred_element_type=jnp.float32)
                    fc_acc = part if fc_acc is None else fc_acc + part

                o = fc_acc + fc_b                                     # fc output
                new_pre.append(o)                                     # dropout == identity
                new_x.append(layer_norm(o + xb, ln_g, ln_b))          # residual + LN

            attn_ref[l] = attn_last * (1.0 / B)   # batch-mean of last head's attn
            x = new_x
            pre_res = new_pre

        for b in range(B):
            pre_ref[b] = pre_res[b]

        if nlayers > 1:
            ffc_w = ffcw_ref[...]
            ffc_b = ffcb_ref[...]
            fln_g = flng_ref[...]
            fln_b = flnb_ref[...]
            for b in range(B):
                y = jnp.dot(x[b], ffc_w, preferred_element_type=jnp.float32) + ffc_b
                x[b] = layer_norm(y + original[b], fln_g, fln_b)

        for b in range(B):
            out_ref[b] = x[b]

    return kernel


# ----------------------------------------------------------------------------
# Host-side glue: learned attention-weight matrix, params, wrapper
# ----------------------------------------------------------------------------

def build_attn_weight(w6, N, K, query=True):
    """Reproduces WeightedAttention.get_attn_weight (bias=False path).

    w6: (6, 1) = [same_sample, same_class, diff_class, stoquery, querytos, query]
    Returns an (N*K+1, N*K+1) matrix of the corresponding scalars.
    """
    S = N * K + 1
    cat = np.zeros((S, S), dtype=np.int32)
    for row in range(N * K):
        cat[row, :] = 2                                            # diff_class
        cat[row, -1] = 3                                           # s -> query
        lo = int(np.floor(row / K) * K)
        hi = int(np.ceil((row + 1) / K) * K)
        cat[row, lo:hi] = 1                                        # same_class
        cat[row, row] = 0                                          # same_sample
    if query:
        cat[-1, :-1] = 4                                           # query -> s
        cat[-1, -1] = 5                                            # query
    else:
        # TODO(synk): query=False drops the last row/col (weights[:-1, :-1]);
        # that path is not exercised here.
        pass
    return w6[:, 0][jnp.asarray(cat)]


def init_encoder_params(key, nlayers, nhead, d_model, d_k, d_v):
    params = {"layers": []}
    for _ in range(nlayers):
        key, kq, kk, kv, kw, kf, kb = jax.random.split(key, 7)
        std_qk = math.sqrt(2.0 / (d_model + d_k))
        std_v = math.sqrt(2.0 / (d_model + d_v))
        gain_tanh = 5.0 / 3.0
        bound = gain_tanh * math.sqrt(6.0 / (6 + 1))
        layer = {
            # stored as (in, out) so we compute x @ W (== PyTorch x @ W.T)
            "w_qs": std_qk * jax.random.normal(kq, (d_model, nhead * d_k), jnp.float32),
            "w_ks": std_qk * jax.random.normal(kk, (d_model, nhead * d_k), jnp.float32),
            "w_vs": std_v * jax.random.normal(kv, (d_model, nhead * d_v), jnp.float32),
            # per-head 6-scalar attention weights (xavier_uniform, tanh gain)
            "attn_w": jax.random.uniform(kw, (nhead, 6, 1), jnp.float32,
                                         minval=-bound, maxval=bound),
            "fc_w": math.sqrt(2.0 / (2 * d_model))
                    * jax.random.normal(kf, (d_model, d_model), jnp.float32),
            "fc_b": (1.0 / math.sqrt(d_model))
                    * jax.random.uniform(kb, (d_model,), jnp.float32,
                                         minval=-1.0, maxval=1.0),
            "ln_g": jnp.ones((d_model,), jnp.float32),
            "ln_b": jnp.zeros((d_model,), jnp.float32),
        }
        params["layers"].append(layer)
    key, kf, kb = jax.random.split(key, 3)
    params["fc_w"] = (1.0 / math.sqrt(d_model)) * jax.random.uniform(
        kf, (d_model, d_model), jnp.float32, minval=-1.0, maxval=1.0)
    params["fc_b"] = (1.0 / math.sqrt(d_model)) * jax.random.uniform(
        kb, (d_model,), jnp.float32, minval=-1.0, maxval=1.0)
    params["ln_g"] = jnp.ones((d_model,), jnp.float32)
    params["ln_b"] = jnp.zeros((d_model,), jnp.float32)
    return params


def encoder_forward(params, samples, N, K, nhead, d_k, d_v, query=True):
    """Whole Encoder forward as a single fused Pallas kernel."""
    B, S, D = samples.shape
    H = nhead
    layers = params["layers"]
    L = len(layers)

    # Fuse / stack per-layer weights once (tiny, done on host side of the call).
    wqkv = jnp.stack(
        [jnp.concatenate([lp["w_qs"], lp["w_ks"], lp["w_vs"]], axis=1)
         for lp in layers], axis=0)                               # (L, D, H*(2*d_k+d_v))
    wtanh = jnp.stack(
        [jnp.tanh(build_attn_weight(lp["attn_w"][h], N, K, query))
         for lp in layers for h in range(H)], axis=0)             # (L*H, S, S)
    fcw = jnp.stack([lp["fc_w"] for lp in layers], axis=0)        # (L, D, D)
    fcb = jnp.stack([lp["fc_b"].reshape(1, D) for lp in layers], axis=0)
    lng = jnp.stack([lp["ln_g"].reshape(1, D) for lp in layers], axis=0)
    lnb = jnp.stack([lp["ln_b"].reshape(1, D) for lp in layers], axis=0)
    ffcw = params["fc_w"]
    ffcb = params["fc_b"].reshape(1, D)
    flng = params["ln_g"].reshape(1, D)
    flnb = params["ln_b"].reshape(1, D)

    kernel = _make_encoder_kernel(B, S, D, H, d_k, d_v, L, 1.0 / math.sqrt(d_k))

    def full_spec(a):
        shp = a.shape
        return pl.BlockSpec(shp, lambda: (0,) * len(shp))

    args = (samples, wqkv, wtanh, fcw, fcb, lng, lnb, ffcw, ffcb, flng, flnb)

    out, attn, pre = pl.pallas_call(
        kernel,
        in_specs=[full_spec(a) for a in args],
        out_specs=[
            pl.BlockSpec((B, S, D), lambda: (0, 0, 0)),
            pl.BlockSpec((L, S, S), lambda: (0, 0, 0)),
            pl.BlockSpec((B, S, D), lambda: (0, 0, 0)),
        ],
        out_shape=[
            jax.ShapeDtypeStruct((B, S, D), jnp.float32),
            jax.ShapeDtypeStruct((L, S, S), jnp.float32),
            jax.ShapeDtypeStruct((B, S, D), jnp.float32),
        ],
    )(*args)

    attentions = [attn[i] for i in range(L)]
    return out, attentions, pre


# ----------------------------------------------------------------------------
# Pure-JAX reference (for correctness check only)
# ----------------------------------------------------------------------------

def _layer_norm_ref(y, g, b, eps=1e-5):
    mu = jnp.mean(y, axis=-1, keepdims=True)
    var = jnp.mean(jnp.square(y - mu), axis=-1, keepdims=True)
    return (y - mu) * jax.lax.rsqrt(var + eps) * g + b


def encoder_forward_ref(params, samples, N, K, nhead, d_k, d_v, query=True):
    B, S, D = samples.shape
    x = samples
    original = samples
    attentions = []
    pre_res = samples
    for lp in params["layers"]:
        residual = x
        x2 = x.reshape(B * S, D)
        q = (x2 @ lp["w_qs"]).reshape(B, S, nhead, d_k)
        k = (x2 @ lp["w_ks"]).reshape(B, S, nhead, d_k)
        v = (x2 @ lp["w_vs"]).reshape(B, S, nhead, d_v)
        heads = []
        attn_last = None
        for h in range(nhead):
            s = jnp.einsum("bqd,bkd->bqk", q[:, :, h], k[:, :, h]) / math.sqrt(d_k)
            soft = jax.nn.softmax(s, axis=-1)
            w = jnp.tanh(build_attn_weight(lp["attn_w"][h], N, K, query))
            a = w[None, :, :] * soft
            attn_last = a
            heads.append(jnp.einsum("bqk,bkd->bqd", a, v[:, :, h]))
        o = jnp.concatenate(heads, axis=-1)
        o = (o.reshape(B * S, D) @ lp["fc_w"] + lp["fc_b"]).reshape(B, S, D)
        pre_res = o
        x = _layer_norm_ref(o + residual, lp["ln_g"], lp["ln_b"])
        attentions.append(jnp.mean(attn_last, axis=0))
    if len(params["layers"]) > 1:
        y = (x.reshape(B * S, D) @ params["fc_w"] + params["fc_b"]).reshape(B, S, D)
        x = _layer_norm_ref(y + original, params["ln_g"], params["ln_b"])
    return x, attentions, pre_res


# ----------------------------------------------------------------------------
# Main
# ----------------------------------------------------------------------------

if __name__ == "__main__":
    # Small, module-consistent shapes: seq = N*K + 1 support+query episode.
    N, K = 2, 3
    B = 2
    S = N * K + 1          # 7
    d_model = 32
    nhead = 4
    d_k = d_v = d_model // nhead   # 8
    nlayers = 2

    key = jax.random.PRNGKey(0)
    key, pkey, xkey = jax.random.split(key, 3)
    params = init_encoder_params(pkey, nlayers, nhead, d_model, d_k, d_v)
    samples = jax.random.normal(xkey, (B, S, d_model), jnp.float32)

    out, attentions, pre_residual = encoder_forward(
        params, samples, N, K, nhead, d_k, d_v, query=True)

    out = jax.block_until_ready(out)
    attentions = [jax.block_until_ready(a) for a in attentions]
    pre_residual = jax.block_until_ready(pre_residual)

    assert out.shape == (B, S, d_model)
    assert all(a.shape == (S, S) for a in attentions)
    assert pre_residual.shape == (B, S, d_model)
    assert bool(jnp.all(jnp.isfinite(out)))

    # Correctness check against a pure-JAX reference (loose tolerance: MXU
    # default matmul precision / different accumulation order).
    ref_out, ref_attn, ref_pre = encoder_forward_ref(
        params, samples, N, K, nhead, d_k, d_v, query=True)
    np.testing.assert_allclose(np.asarray(out), np.asarray(ref_out),
                               rtol=5e-2, atol=5e-2)
    for a, ra in zip(attentions, ref_attn):
        np.testing.assert_allclose(np.asarray(a), np.asarray(ra),
                                   rtol=5e-2, atol=5e-2)
    np.testing.assert_allclose(np.asarray(pre_residual), np.asarray(ref_pre),
                               rtol=5e-2, atol=5e-2)

    print("KERNEL_OK")
</pallas_src>

<mosaic_0001>
module attributes {stable_mosaic.version = 11 : i64} {
  func.func @kernel(%arg0: memref<2x7x32xf32, #tpu.memory_space<vmem>>, %arg1: memref<2x32x96xf32, #tpu.memory_space<vmem>>, %arg2: memref<8x7x7xf32, #tpu.memory_space<vmem>>, %arg3: memref<2x32x32xf32, #tpu.memory_space<vmem>>, %arg4: memref<2x1x32xf32, #tpu.memory_space<vmem>>, %arg5: memref<2x1x32xf32, #tpu.memory_space<vmem>>, %arg6: memref<2x1x32xf32, #tpu.memory_space<vmem>>, %arg7: memref<32x32xf32, #tpu.memory_space<vmem>>, %arg8: memref<1x32xf32, #tpu.memory_space<vmem>>, %arg9: memref<1x32xf32, #tpu.memory_space<vmem>>, %arg10: memref<1x32xf32, #tpu.memory_space<vmem>>, %arg11: memref<2x7x32xf32, #tpu.memory_space<vmem>>, %arg12: memref<2x7x7xf32, #tpu.memory_space<vmem>>, %arg13: memref<2x7x32xf32, #tpu.memory_space<vmem>>) attributes {dimension_semantics = [], scalar_prefetch = 0 : i64, scratch_operands = 0 : i64, tpu.core_type = #tpu.core_type<tc>} {
    %c0 = arith.constant 0 : index
    %c0_0 = arith.constant 0 : index
    %c0_1 = arith.constant 0 : index
    %0 = vector.load %arg0[%c0, %c0_0, %c0_1] : memref<2x7x32xf32, #tpu.memory_space<vmem>>, vector<1x7x32xf32>
    %1 = vector.shape_cast %0 : vector<1x7x32xf32> to vector<7x32xf32>
    %c1 = arith.constant 1 : index
    %c0_2 = arith.constant 0 : index
    %c0_3 = arith.constant 0 : index
    %2 = vector.load %arg0[%c1, %c0_2, %c0_3] : memref<2x7x32xf32, #tpu.memory_space<vmem>>, vector<1x7x32xf32>
    %3 = vector.shape_cast %2 : vector<1x7x32xf32> to vector<7x32xf32>
    %c0_4 = arith.constant 0 : index
    %c0_5 = arith.constant 0 : index
    %c0_6 = arith.constant 0 : index
    %4 = vector.load %arg1[%c0_4, %c0_5, %c0_6] : memref<2x32x96xf32, #tpu.memory_space<vmem>>, vector<1x32x96xf32>
    %5 = vector.shape_cast %4 : vector<1x32x96xf32> to vector<32x96xf32>
    %c0_7 = arith.constant 0 : index
    %c0_8 = arith.constant 0 : index
    %c0_9 = arith.constant 0 : index
    %6 = vector.load %arg3[%c0_7, %c0_8, %c0_9] : memref<2x32x32xf32, #tpu.memory_space<vmem>>, vector<1x32x32xf32>
    %7 = vector.shape_cast %6 : vector<1x32x32xf32> to vector<32x32xf32>
    %c0_10 = arith.constant 0 : index
    %c0_11 = arith.constant 0 : index
    %c0_12 = arith.constant 0 : index
    %8 = vector.load %arg4[%c0_10, %c0_11, %c0_12] : memref<2x1x32xf32, #tpu.memory_space<vmem>>, vector<1x1x32xf32>
    %9 = vector.shape_cast %8 : vector<1x1x32xf32> to vector<1x32xf32>
    %c0_13 = arith.constant 0 : index
    %c0_14 = arith.constant 0 : index
    %c0_15 = arith.constant 0 : index
    %10 = vector.load %arg5[%c0_13, %c0_14, %c0_15] : memref<2x1x32xf32, #tpu.memory_space<vmem>>, vector<1x1x32xf32>
    %11 = vector.shape_cast %10 : vector<1x1x32xf32> to vector<1x32xf32>
    %c0_16 = arith.constant 0 : index
    %c0_17 = arith.constant 0 : index
    %c0_18 = arith.constant 0 : index
    %12 = vector.load %arg6[%c0_16, %c0_17, %c0_18] : memref<2x1x32xf32, #tpu.memory_space<vmem>>, vector<1x1x32xf32>
    %13 = vector.shape_cast %12 : vector<1x1x32xf32> to vector<1x32xf32>
    %cst = arith.constant 0.000000e+00 : f32
    %14 = vector.broadcast %cst : f32 to vector<7x7xf32>
    %cst_19 = arith.constant dense<0.000000e+00> : vector<7x96xf32>
    %15 = tpu.matmul %1, %5, %cst_19 {dimension_numbers = #tpu.dot_dimension_numbers<[1], [0], [0], [1], [0, 0, 1, 1], [], []>} : vector<7x32xf32>, vector<32x96xf32>, vector<7x96xf32> -> vector<7x96xf32>
    %16 = vector.extract_strided_slice %15 {offsets = [0, 0], sizes = [7, 8], strides = [1, 1]} : vector<7x96xf32> to vector<7x8xf32>
    %17 = vector.extract_strided_slice %15 {offsets = [0, 32], sizes = [7, 8], strides = [1, 1]} : vector<7x96xf32> to vector<7x8xf32>
    %18 = vector.extract_strided_slice %15 {offsets = [0, 64], sizes = [7, 8], strides = [1, 1]} : vector<7x96xf32> to vector<7x8xf32>
    %cst_20 = arith.constant dense<0.000000e+00> : vector<7x7xf32>
    %19 = tpu.matmul %16, %17, %cst_20 {dimension_numbers = #tpu.dot_dimension_numbers<[1], [1], [0], [0], [0, 0, 1, 0], [], []>} : vector<7x8xf32>, vector<7x8xf32>, vector<7x7xf32> -> vector<7x7xf32>
    %cst_21 = arith.constant 0.353553385 : f32
    %20 = vector.broadcast %cst_21 : f32 to vector<7x7xf32>
    %21 = arith.mulf %19, %20 : vector<7x7xf32>
    %cst_22 = arith.constant dense<0xFF800000> : vector<7xf32>
    %22 = vector.multi_reduction <maximumf>, %21, %cst_22 [1] : vector<7x7xf32> to vector<7xf32>
    %23 = vector.shape_cast %22 : vector<7xf32> to vector<7x1xf32>
    %24 = vector.broadcast %23 : vector<7x1xf32> to vector<7x7xf32>
    %25 = arith.subf %21, %24 : vector<7x7xf32>
    %26 = math.exp %25 : vector<7x7xf32>
    %cst_23 = arith.constant dense<0.000000e+00> : vector<7xf32>
    %27 = vector.multi_reduction <add>, %26, %cst_23 [1] : vector<7x7xf32> to vector<7xf32>
    %28 = vector.shape_cast %27 : vector<7xf32> to vector<7x1xf32>
    %29 = vector.broadcast %28 : vector<7x1xf32> to vector<7x7xf32>
    %30 = arith.divf %26, %29 : vector<7x7xf32>
    %c0_24 = arith.constant 0 : index
    %c0_25 = arith.constant 0 : index
    %c0_26 = arith.constant 0 : index
    %31 = vector.load %arg2[%c0_24, %c0_25, %c0_26] : memref<8x7x7xf32, #tpu.memory_space<vmem>>, vector<1x7x7xf32>
    %32 = vector.shape_cast %31 : vector<1x7x7xf32> to vector<7x7xf32>
    %33 = arith.mulf %32, %30 : vector<7x7xf32>
    %cst_27 = arith.constant dense<0.000000e+00> : vector<7x8xf32>
    %34 = tpu.matmul %33, %18, %cst_27 {dimension_numbers = #tpu.dot_dimension_numbers<[1], [0], [0], [1], [0, 0, 1, 1], [], []>} : vector<7x7xf32>, vector<7x8xf32>, vector<7x8xf32> -> vector<7x8xf32>
    %35 = vector.extract_strided_slice %7 {offsets = [0, 0], sizes = [8, 32], strides = [1, 1]} : vector<32x32xf32> to vector<8x32xf32>
    %cst_28 = arith.constant dense<0.000000e+00> : vector<7x32xf32>
    %36 = tpu.matmul %34, %35, %cst_28 {dimension_numbers = #tpu.dot_dimension_numbers<[1], [0], [0], [1], [0, 0, 1, 1], [], []>} : vector<7x8xf32>, vector<8x32xf32>, vector<7x32xf32> -> vector<7x32xf32>
    %37 = vector.extract_strided_slice %15 {offsets = [0, 8], sizes = [7, 8], strides = [1, 1]} : vector<7x96xf32> to vector<7x8xf32>
    %38 = vector.extract_strided_slice %15 {offsets = [0, 40], sizes = [7, 8], strides = [1, 1]} : vector<7x96xf32> to vector<7x8xf32>
    %39 = vector.extract_strided_slice %15 {offsets = [0, 72], sizes = [7, 8], strides = [1, 1]} : vector<7x96xf32> to vector<7x8xf32>
    %cst_29 = arith.constant dense<0.000000e+00> : vector<7x7xf32>
    %40 = tpu.matmul %37, %38, %cst_29 {dimension_numbers = #tpu.dot_dimension_numbers<[1], [1], [0], [0], [0, 0, 1, 0], [], []>} : vector<7x8xf32>, vector<7x8xf32>, vector<7x7xf32> -> vector<7x7xf32>
    %cst_30 = arith.constant 0.353553385 : f32
    %41 = vector.broadcast %cst_30 : f32 to vector<7x7xf32>
    %42 = arith.mulf %40, %41 : vector<7x7xf32>
    %cst_31 = arith.constant dense<0xFF800000> : vector<7xf32>
    %43 = vector.multi_reduction <maximumf>, %42, %cst_31 [1] : vector<7x7xf32> to vector<7xf32>
    %44 = vector.shape_cast %43 : vector<7xf32> to vector<7x1xf32>
    %45 = vector.broadcast %44 : vector<7x1xf32> to vector<7x7xf32>
    %46 = arith.subf %42, %45 : vector<7x7xf32>
    %47 = math.exp %46 : vector<7x7xf32>
    %cst_32 = arith.constant dense<0.000000e+00> : vector<7xf32>
    %48 = vector.multi_reduction <add>, %47, %cst_32 [1] : vector<7x7xf32> to vector<7xf32>
    %49 = vector.shape_cast %48 : vector<7xf32> to vector<7x1xf32>
    %50 = vector.broadcast %49 : vector<7x1xf32> to vector<7x7xf32>
    %51 = arith.divf %47, %50 : vector<7x7xf32>
    %c1_33 = arith.constant 1 : index
    %c0_34 = arith.constant 0 : index
    %c0_35 = arith.constant 0 : index
    %52 = vector.load %arg2[%c1_33, %c0_34, %c0_35] : memref<8x7x7xf32, #tpu.memory_space<vmem>>, vector<1x7x7xf32>
    %53 = vector.shape_cast %52 : vector<1x7x7xf32> to vector<7x7xf32>
    %54 = arith.mulf %53, %51 : vector<7x7xf32>
    %cst_36 = arith.constant dense<0.000000e+00> : vector<7x8xf32>
    %55 = tpu.matmul %54, %39, %cst_36 {dimension_numbers = #tpu.dot_dimension_numbers<[1], [0], [0], [1], [0, 0, 1, 1], [], []>} : vector<7x7xf32>, vector<7x8xf32>, vector<7x8xf32> -> vector<7x8xf32>
    %56 = vector.extract_strided_slice %7 {offsets = [8, 0], sizes = [8, 32], strides = [1, 1]} : vector<32x32xf32> to vector<8x32xf32>
    %cst_37 = arith.constant dense<0.000000e+00> : vector<7x32xf32>
    %57 = tpu.matmul %55, %56, %cst_37 {dimension_numbers = #tpu.dot_dimension_numbers<[1], [0], [0], [1], [0, 0, 1, 1], [], []>} : vector<7x8xf32>, vector<8x32xf32>, vector<7x32xf32> -> vector<7x32xf32>
    %58 = arith.addf %36, %57 : vector<7x32xf32>
    %59 = vector.extract_strided_slice %15 {offsets = [0, 16], sizes = [7, 8], strides = [1, 1]} : vector<7x96xf32> to vector<7x8xf32>
    %60 = vector.extract_strided_slice %15 {offsets = [0, 48], sizes = [7, 8], strides = [1, 1]} : vector<7x96xf32> to vector<7x8xf32>
    %61 = vector.extract_strided_slice %15 {offsets = [0, 80], sizes = [7, 8], strides = [1, 1]} : vector<7x96xf32> to vector<7x8xf32>
    %cst_38 = arith.constant dense<0.000000e+00> : vector<7x7xf32>
    %62 = tpu.matmul %59, %60, %cst_38 {dimension_numbers = #tpu.dot_dimension_numbers<[1], [1], [0], [0], [0, 0, 1, 0], [], []>} : vector<7x8xf32>, vector<7x8xf32>, vector<7x7xf32> -> vector<7x7xf32>
    %cst_39 = arith.constant 0.353553385 : f32
    %63 = vector.broadcast %cst_39 : f32 to vector<7x7xf32>
    %64 = arith.mulf %62, %63 : vector<7x7xf32>
    %cst_40 = arith.constant dense<0xFF800000> : vector<7xf32>
    %65 = vector.multi_reduction <maximumf>, %64, %cst_40 [1] : vector<7x7xf32> to vector<7xf32>
    %66 = vector.shape_cast %65 : vector<7xf32> to vector<7x1xf32>
    %67 = vector.broadcast %66 : vector<7x1xf32> to vector<7x7xf32>
    %68 = arith.subf %64, %67 : vector<7x7xf32>
    %69 = math.exp %68 : vector<7x7xf32>
    %cst_41 = arith.constant dense<0.000000e+00> : vector<7xf32>
    %70 = vector.multi_reduction <add>, %69, %cst_41 [1] : vector<7x7xf32> to vector<7xf32>
    %71 = vector.shape_cast %70 : vector<7xf32> to vector<7x1xf32>
    %72 = vector.broadcast %71 : vector<7x1xf32> to vector<7x7xf32>
    %73 = arith.divf %69, %72 : vector<7x7xf32>
    %c2 = arith.constant 2 : index
    %c0_42 = arith.constant 0 : index
    %c0_43 = arith.constant 0 : index
    %74 = vector.load %arg2[%c2, %c0_42, %c0_43] : memref<8x7x7xf32, #tpu.memory_space<vmem>>, vector<1x7x7xf32>
    %75 = vector.shape_cast %74 : vector<1x7x7xf32> to vector<7x7xf32>
    %76 = arith.mulf %75, %73 : vector<7x7xf32>
    %cst_44 = arith.constant dense<0.000000e+00> : vector<7x8xf32>
    %77 = tpu.matmul %76, %61, %cst_44 {dimension_numbers = #tpu.dot_dimension_numbers<[1], [0], [0], [1], [0, 0, 1, 1], [], []>} : vector<7x7xf32>, vector<7x8xf32>, vector<7x8xf32> -> vector<7x8xf32>
    %78 = vector.extract_strided_slice %7 {offsets = [16, 0], sizes = [8, 32], strides = [1, 1]} : vector<32x32xf32> to vector<8x32xf32>
    %cst_45 = arith.constant dense<0.000000e+00> : vector<7x32xf32>
    %79 = tpu.matmul %77, %78, %cst_45 {dimension_numbers = #tpu.dot_dimension_numbers<[1], [0], [0], [1], [0, 0, 1, 1], [], []>} : vector<7x8xf32>, vector<8x32xf32>, vector<7x32xf32> -> vector<7x32xf32>
    %80 = arith.addf %58, %79 : vector<7x32xf32>
    %81 = vector.extract_strided_slice %15 {offsets = [0, 24], sizes = [7, 8], strides = [1, 1]} : vector<7x96xf32> to vector<7x8xf32>
    %82 = vector.extract_strided_slice %15 {offsets = [0, 56], sizes = [7, 8], strides = [1, 1]} : vector<7x96xf32> to vector<7x8xf32>
    %83 = vector.extract_strided_slice %15 {offsets = [0, 88], sizes = [7, 8], strides = [1, 1]} : vector<7x96xf32> to vector<7x8xf32>
    %cst_46 = arith.constant dense<0.000000e+00> : vector<7x7xf32>
    %84 = tpu.matmul %81, %82, %cst_46 {dimension_numbers = #tpu.dot_dimension_numbers<[1], [1], [0], [0], [0, 0, 1, 0], [], []>} : vector<7x8xf32>, vector<7x8xf32>, vector<7x7xf32> -> vector<7x7xf32>
    %cst_47 = arith.constant 0.353553385 : f32
    %85 = vector.broadcast %cst_47 : f32 to vector<7x7xf32>
    %86 = arith.mulf %84, %85 : vector<7x7xf32>
    %cst_48 = arith.constant dense<0xFF800000> : vector<7xf32>
    %87 = vector.multi_reduction <maximumf>, %86, %cst_48 [1] : vector<7x7xf32> to vector<7xf32>
    %88 = vector.shape_cast %87 : vector<7xf32> to vector<7x1xf32>
    %89 = vector.broadcast %88 : vector<7x1xf32> to vector<7x7xf32>
    %90 = arith.subf %86, %89 : vector<7x7xf32>
    %91 = math.exp %90 : vector<7x7xf32>
    %cst_49 = arith.constant dense<0.000000e+00> : vector<7xf32>
    %92 = vector.multi_reduction <add>, %91, %cst_49 [1] : vector<7x7xf32> to vector<7xf32>
    %93 = vector.shape_cast %92 : vector<7xf32> to vector<7x1xf32>
    %94 = vector.broadcast %93 : vector<7x1xf32> to vector<7x7xf32>
    %95 = arith.divf %91, %94 : vector<7x7xf32>
    %c3 = arith.constant 3 : index
    %c0_50 = arith.constant 0 : index
    %c0_51 = arith.constant 0 : index
    %96 = vector.load %arg2[%c3, %c0_50, %c0_51] : memref<8x7x7xf32, #tpu.memory_space<vmem>>, vector<1x7x7xf32>
    %97 = vector.shape_cast %96 : vector<1x7x7xf32> to vector<7x7xf32>
    %98 = arith.mulf %97, %95 : vector<7x7xf32>
    %99 = arith.addf %14, %98 : vector<7x7xf32>
    %cst_52 = arith.constant dense<0.000000e+00> : vector<7x8xf32>
    %100 = tpu.matmul %98, %83, %cst_52 {dimension_numbers = #tpu.dot_dimension_numbers<[1], [0], [0], [1], [0, 0, 1, 1], [], []>} : vector<7x7xf32>, vector<7x8xf32>, vector<7x8xf32> -> vector<7x8xf32>
    %101 = vector.extract_strided_slice %7 {offsets = [24, 0], sizes = [8, 32], strides = [1, 1]} : vector<32x32xf32> to vector<8x32xf32>
    %cst_53 = arith.constant dense<0.000000e+00> : vector<7x32xf32>
    %102 = tpu.matmul %100, %101, %cst_53 {dimension_numbers = #tpu.dot_dimension_numbers<[1], [0], [0], [1], [0, 0, 1, 1], [], []>} : vector<7x8xf32>, vector<8x32xf32>, vector<7x32xf32> -> vector<7x32xf32>
    %103 = arith.addf %80, %102 : vector<7x32xf32>
    %104 = vector.broadcast %9 : vector<1x32xf32> to vector<7x32xf32>
    %105 = arith.addf %103, %104 : vector<7x32xf32>
    %106 = arith.addf %105, %1 : vector<7x32xf32>
    %cst_54 = arith.constant dense<0.000000e+00> : vector<7xf32>
    %107 = vector.multi_reduction <add>, %106, %cst_54 [1] : vector<7x32xf32> to vector<7xf32>
    %108 = vector.shape_cast %107 : vector<7xf32> to vector<7x1xf32>
    %cst_55 = arith.constant 3.200000e+01 : f32
    %109 = vector.broadcast %cst_55 : f32 to vector<7x1xf32>
    %110 = arith.divf %108, %109 : vector<7x1xf32>
    %111 = vector.broadcast %110 : vector<7x1xf32> to vector<7x32xf32>
    %112 = arith.subf %106, %111 : vector<7x32xf32>
    %113 = arith.mulf %112, %112 : vector<7x32xf32>
    %cst_56 = arith.constant dense<0.000000e+00> : vector<7xf32>
    %114 = vector.multi_reduction <add>, %113, %cst_56 [1] : vector<7x32xf32> to vector<7xf32>
    %115 = vector.shape_cast %114 : vector<7xf32> to vector<7x1xf32>
    %cst_57 = arith.constant 3.200000e+01 : f32
    %116 = vector.broadcast %cst_57 : f32 to vector<7x1xf32>
    %117 = arith.divf %115, %116 : vector<7x1xf32>
    %118 = vector.broadcast %110 : vector<7x1xf32> to vector<7x32xf32>
    %119 = arith.subf %106, %118 : vector<7x32xf32>
    %cst_58 = arith.constant 9.99999974E-6 : f32
    %120 = vector.broadcast %cst_58 : f32 to vector<7x1xf32>
    %121 = arith.addf %117, %120 : vector<7x1xf32>
    %122 = math.rsqrt %121 : vector<7x1xf32>
    %123 = vector.broadcast %122 : vector<7x1xf32> to vector<7x32xf32>
    %124 = arith.mulf %119, %123 : vector<7x32xf32>
    %125 = vector.broadcast %11 : vector<1x32xf32> to vector<7x32xf32>
    %126 = arith.mulf %124, %125 : vector<7x32xf32>
    %127 = vector.broadcast %13 : vector<1x32xf32> to vector<7x32xf32>
    %128 = arith.addf %126, %127 : vector<7x32xf32>
    %cst_59 = arith.constant dense<0.000000e+00> : vector<7x96xf32>
    %129 = tpu.matmul %3, %5, %cst_59 {dimension_numbers = #tpu.dot_dimension_numbers<[1], [0], [0], [1], [0, 0, 1, 1], [], []>} : vector<7x32xf32>, vector<32x96xf32>, vector<7x96xf32> -> vector<7x96xf32>
    %130 = vector.extract_strided_slice %129 {offsets = [0, 0], sizes = [7, 8], strides = [1, 1]} : vector<7x96xf32> to vector<7x8xf32>
    %131 = vector.extract_strided_slice %129 {offsets = [0, 32], sizes = [7, 8], strides = [1, 1]} : vector<7x96xf32> to vector<7x8xf32>
    %132 = vector.extract_strided_slice %129 {offsets = [0, 64], sizes = [7, 8], strides = [1, 1]} : vector<7x96xf32> to vector<7x8xf32>
    %cst_60 = arith.constant dense<0.000000e+00> : vector<7x7xf32>
    %133 = tpu.matmul %130, %131, %cst_60 {dimension_numbers = #tpu.dot_dimension_numbers<[1], [1], [0], [0], [0, 0, 1, 0], [], []>} : vector<7x8xf32>, vector<7x8xf32>, vector<7x7xf32> -> vector<7x7xf32>
    %cst_61 = arith.constant 0.353553385 : f32
    %134 = vector.broadcast %cst_61 : f32 to vector<7x7xf32>
    %135 = arith.mulf %133, %134 : vector<7x7xf32>
    %cst_62 = arith.constant dense<0xFF800000> : vector<7xf32>
    %136 = vector.multi_reduction <maximumf>, %135, %cst_62 [1] : vector<7x7xf32> to vector<7xf32>
    %137 = vector.shape_cast %136 : vector<7xf32> to vector<7x1xf32>
    %138 = vector.broadcast %137 : vector<7x1xf32> to vector<7x7xf32>
    %139 = arith.subf %135, %138 : vector<7x7xf32>
    %140 = math.exp %139 : vector<7x7xf32>
    %cst_63 = arith.constant dense<0.000000e+00> : vector<7xf32>
    %141 = vector.multi_reduction <add>, %140, %cst_63 [1] : vector<7x7xf32> to vector<7xf32>
    %142 = vector.shape_cast %141 : vector<7xf32> to vector<7x1xf32>
    %143 = vector.broadcast %142 : vector<7x1xf32> to vector<7x7xf32>
    %144 = arith.divf %140, %143 : vector<7x7xf32>
    %c0_64 = arith.constant 0 : index
    %c0_65 = arith.constant 0 : index
    %c0_66 = arith.constant 0 : index
    %145 = vector.load %arg2[%c0_64, %c0_65, %c0_66] : memref<8x7x7xf32, #tpu.memory_space<vmem>>, vector<1x7x7xf32>
    %146 = vector.shape_cast %145 : vector<1x7x7xf32> to vector<7x7xf32>
    %147 = arith.mulf %146, %144 : vector<7x7xf32>
    %cst_67 = arith.constant dense<0.000000e+00> : vector<7x8xf32>
    %148 = tpu.matmul %147, %132, %cst_67 {dimension_numbers = #tpu.dot_dimension_numbers<[1], [0], [0], [1], [0, 0, 1, 1], [], []>} : vector<7x7xf32>, vector<7x8xf32>, vector<7x8xf32> -> vector<7x8xf32>
    %149 = vector.extract_strided_slice %7 {offsets = [0, 0], sizes = [8, 32], strides = [1, 1]} : vector<32x32xf32> to vector<8x32xf32>
    %cst_68 = arith.constant dense<0.000000e+00> : vector<7x32xf32>
    %150 = tpu.matmul %148, %149, %cst_68 {dimension_numbers = #tpu.dot_dimension_numbers<[1], [0], [0], [1], [0, 0, 1, 1], [], []>} : vector<7x8xf32>, vector<8x32xf32>, vector<7x32xf32> -> vector<7x32xf32>
    %151 = vector.extract_strided_slice %129 {offsets = [0, 8], sizes = [7, 8], strides = [1, 1]} : vector<7x96xf32> to vector<7x8xf32>
    %152 = vector.extract_strided_slice %129 {offsets = [0, 40], sizes = [7, 8], strides = [1, 1]} : vector<7x96xf32> to vector<7x8xf32>
    %153 = vector.extract_strided_slice %129 {offsets = [0, 72], sizes = [7, 8], strides = [1, 1]} : vector<7x96xf32> to vector<7x8xf32>
    %cst_69 = arith.constant dense<0.000000e+00> : vector<7x7xf32>
    %154 = tpu.matmul %151, %152, %cst_69 {dimension_numbers = #tpu.dot_dimension_numbers<[1], [1], [0], [0], [0, 0, 1, 0], [], []>} : vector<7x8xf32>, vector<7x8xf32>, vector<7x7xf32> -> vector<7x7xf32>
    %cst_70 = arith.constant 0.353553385 : f32
    %155 = vector.broadcast %cst_70 : f32 to vector<7x7xf32>
    %156 = arith.mulf %154, %155 : vector<7x7xf32>
    %cst_71 = arith.constant dense<0xFF800000> : vector<7xf32>
    %157 = vector.multi_reduction <maximumf>, %156, %cst_71 [1] : vector<7x7xf32> to vector<7xf32>
    %158 = vector.shape_cast %157 : vector<7xf32> to vector<7x1xf32>
    %159 = vector.broadcast %158 : vector<7x1xf32> to vector<7x7xf32>
    %160 = arith.subf %156, %159 : vector<7x7xf32>
    %161 = math.exp %160 : vector<7x7xf32>
    %cst_72 = arith.constant dense<0.000000e+00> : vector<7xf32>
    %162 = vector.multi_reduction <add>, %161, %cst_72 [1] : vector<7x7xf32> to vector<7xf32>
    %163 = vector.shape_cast %162 : vector<7xf32> to vector<7x1xf32>
    %164 = vector.broadcast %163 : vector<7x1xf32> to vector<7x7xf32>
    %165 = arith.divf %161, %164 : vector<7x7xf32>
    %c1_73 = arith.constant 1 : index
    %c0_74 = arith.constant 0 : index
    %c0_75 = arith.constant 0 : index
    %166 = vector.load %arg2[%c1_73, %c0_74, %c0_75] : memref<8x7x7xf32, #tpu.memory_space<vmem>>, vector<1x7x7xf32>
    %167 = vector.shape_cast %166 : vector<1x7x7xf32> to vector<7x7xf32>
    %168 = arith.mulf %167, %165 : vector<7x7xf32>
    %cst_76 = arith.constant dense<0.000000e+00> : vector<7x8xf32>
    %169 = tpu.matmul %168, %153, %cst_76 {dimension_numbers = #tpu.dot_dimension_numbers<[1], [0], [0], [1], [0, 0, 1, 1], [], []>} : vector<7x7xf32>, vector<7x8xf32>, vector<7x8xf32> -> vector<7x8xf32>
    %170 = vector.extract_strided_slice %7 {offsets = [8, 0], sizes = [8, 32], strides = [1, 1]} : vector<32x32xf32> to vector<8x32xf32>
    %cst_77 = arith.constant dense<0.000000e+00> : vector<7x32xf32>
    %171 = tpu.matmul %169, %170, %cst_77 {dimension_numbers = #tpu.dot_dimension_numbers<[1], [0], [0], [1], [0, 0, 1, 1], [], []>} : vector<7x8xf32>, vector<8x32xf32>, vector<7x32xf32> -> vector<7x32xf32>
    %172 = arith.addf %150, %171 : vector<7x32xf32>
    %173 = vector.extract_strided_slice %129 {offsets = [0, 16], sizes = [7, 8], strides = [1, 1]} : vector<7x96xf32> to vector<7x8xf32>
    %174 = vector.extract_strided_slice %129 {offsets = [0, 48], sizes = [7, 8], strides = [1, 1]} : vector<7x96xf32> to vector<7x8xf32>
    %175 = vector.extract_strided_slice %129 {offsets = [0, 80], sizes = [7, 8], strides = [1, 1]} : vector<7x96xf32> to vector<7x8xf32>
    %cst_78 = arith.constant dense<0.000000e+00> : vector<7x7xf32>
    %176 = tpu.matmul %173, %174, %cst_78 {dimension_numbers = #tpu.dot_dimension_numbers<[1], [1], [0], [0], [0, 0, 1, 0], [], []>} : vector<7x8xf32>, vector<7x8xf32>, vector<7x7xf32> -> vector<7x7xf32>
    %cst_79 = arith.constant 0.353553385 : f32
    %177 = vector.broadcast %cst_79 : f32 to vector<7x7xf32>
    %178 = arith.mulf %176, %177 : vector<7x7xf32>
    %cst_80 = arith.constant dense<0xFF800000> : vector<7xf32>
    %179 = vector.multi_reduction <maximumf>, %178, %cst_80 [1] : vector<7x7xf32> to vector<7xf32>
    %180 = vector.shape_cast %179 : vector<7xf32> to vector<7x1xf32>
    %181 = vector.broadcast %180 : vector<7x1xf32> to vector<7x7xf32>
    %182 = arith.subf %178, %181 : vector<7x7xf32>
    %183 = math.exp %182 : vector<7x7xf32>
    %cst_81 = arith.constant dense<0.000000e+00> : vector<7xf32>
    %184 = vector.multi_reduction <add>, %183, %cst_81 [1] : vector<7x7xf32> to vector<7xf32>
    %185 = vector.shape_cast %184 : vector<7xf32> to vector<7x1xf32>
    %186 = vector.broadcast %185 : vector<7x1xf32> to vector<7x7xf32>
    %187 = arith.divf %183, %186 : vector<7x7xf32>
    %c2_82 = arith.constant 2 : index
    %c0_83 = arith.constant 0 : index
    %c0_84 = arith.constant 0 : index
    %188 = vector.load %arg2[%c2_82, %c0_83, %c0_84] : memref<8x7x7xf32, #tpu.memory_space<vmem>>, vector<1x7x7xf32>
    %189 = vector.shape_cast %188 : vector<1x7x7xf32> to vector<7x7xf32>
    %190 = arith.mulf %189, %187 : vector<7x7xf32>
    %cst_85 = arith.constant dense<0.000000e+00> : vector<7x8xf32>
    %191 = tpu.matmul %190, %175, %cst_85 {dimension_numbers = #tpu.dot_dimension_numbers<[1], [0], [0], [1], [0, 0, 1, 1], [], []>} : vector<7x7xf32>, vector<7x8xf32>, vector<7x8xf32> -> vector<7x8xf32>
    %192 = vector.extract_strided_slice %7 {offsets = [16, 0], sizes = [8, 32], strides = [1, 1]} : vector<32x32xf32> to vector<8x32xf32>
    %cst_86 = arith.constant dense<0.000000e+00> : vector<7x32xf32>
    %193 = tpu.matmul %191, %192, %cst_86 {dimension_numbers = #tpu.dot_dimension_numbers<[1], [0], [0], [1], [0, 0, 1, 1], [], []>} : vector<7x8xf32>, vector<8x32xf32>, vector<7x32xf32> -> vector<7x32xf32>
    %194 = arith.addf %172, %193 : vector<7x32xf32>
    %195 = vector.extract_strided_slice %129 {offsets = [0, 24], sizes = [7, 8], strides = [1, 1]} : vector<7x96xf32> to vector<7x8xf32>
    %196 = vector.extract_strided_slice %129 {offsets = [0, 56], sizes = [7, 8], strides = [1, 1]} : vector<7x96xf32> to vector<7x8xf32>
    %197 = vector.extract_strided_slice %129 {offsets = [0, 88], sizes = [7, 8], strides = [1, 1]} : vector<7x96xf32> to vector<7x8xf32>
    %cst_87 = arith.constant dense<0.000000e+00> : vector<7x7xf32>
    %198 = tpu.matmul %195, %196, %cst_87 {dimension_numbers = #tpu.dot_dimension_numbers<[1], [1], [0], [0], [0, 0, 1, 0], [], []>} : vector<7x8xf32>, vector<7x8xf32>, vector<7x7xf32> -> vector<7x7xf32>
    %cst_88 = arith.constant 0.353553385 : f32
    %199 = vector.broadcast %cst_88 : f32 to vector<7x7xf32>
    %200 = arith.mulf %198, %199 : vector<7x7xf32>
    %cst_89 = arith.constant dense<0xFF800000> : vector<7xf32>
    %201 = vector.multi_reduction <maximumf>, %200, %cst_89 [1] : vector<7x7xf32> to vector<7xf32>
    %202 = vector.shape_cast %201 : vector<7xf32> to vector<7x1xf32>
    %203 = vector.broadcast %202 : vector<7x1xf32> to vector<7x7xf32>
    %204 = arith.subf %200, %203 : vector<7x7xf32>
    %205 = math.exp %204 : vector<7x7xf32>
    %cst_90 = arith.constant dense<0.000000e+00> : vector<7xf32>
    %206 = vector.multi_reduction <add>, %205, %cst_90 [1] : vector<7x7xf32> to vector<7xf32>
    %207 = vector.shape_cast %206 : vector<7xf32> to vector<7x1xf32>
    %208 = vector.broadcast %207 : vector<7x1xf32> to vector<7x7xf32>
    %209 = arith.divf %205, %208 : vector<7x7xf32>
    %c3_91 = arith.constant 3 : index
    %c0_92 = arith.constant 0 : index
    %c0_93 = arith.constant 0 : index
    %210 = vector.load %arg2[%c3_91, %c0_92, %c0_93] : memref<8x7x7xf32, #tpu.memory_space<vmem>>, vector<1x7x7xf32>
    %211 = vector.shape_cast %210 : vector<1x7x7xf32> to vector<7x7xf32>
    %212 = arith.mulf %211, %209 : vector<7x7xf32>
    %213 = arith.addf %99, %212 : vector<7x7xf32>
    %cst_94 = arith.constant dense<0.000000e+00> : vector<7x8xf32>
    %214 = tpu.matmul %212, %197, %cst_94 {dimension_numbers = #tpu.dot_dimension_numbers<[1], [0], [0], [1], [0, 0, 1, 1], [], []>} : vector<7x7xf32>, vector<7x8xf32>, vector<7x8xf32> -> vector<7x8xf32>
    %215 = vector.extract_strided_slice %7 {offsets = [24, 0], sizes = [8, 32], strides = [1, 1]} : vector<32x32xf32> to vector<8x32xf32>
    %cst_95 = arith.constant dense<0.000000e+00> : vector<7x32xf32>
    %216 = tpu.matmul %214, %215, %cst_95 {dimension_numbers = #tpu.dot_dimension_numbers<[1], [0], [0], [1], [0, 0, 1, 1], [], []>} : vector<7x8xf32>, vector<8x32xf32>, vector<7x32xf32> -> vector<7x32xf32>
    %217 = arith.addf %194, %216 : vector<7x32xf32>
    %218 = vector.broadcast %9 : vector<1x32xf32> to vector<7x32xf32>
    %219 = arith.addf %217, %218 : vector<7x32xf32>
    %220 = arith.addf %219, %3 : vector<7x32xf32>
    %cst_96 = arith.constant dense<0.000000e+00> : vector<7xf32>
    %221 = vector.multi_reduction <add>, %220, %cst_96 [1] : vector<7x32xf32> to vector<7xf32>
    %222 = vector.shape_cast %221 : vector<7xf32> to vector<7x1xf32>
    %cst_97 = arith.constant 3.200000e+01 : f32
    %223 = vector.broadcast %cst_97 : f32 to vector<7x1xf32>
    %224 = arith.divf %222, %223 : vector<7x1xf32>
    %225 = vector.broadcast %224 : vector<7x1xf32> to vector<7x32xf32>
    %226 = arith.subf %220, %225 : vector<7x32xf32>
    %227 = arith.mulf %226, %226 : vector<7x32xf32>
    %cst_98 = arith.constant dense<0.000000e+00> : vector<7xf32>
    %228 = vector.multi_reduction <add>, %227, %cst_98 [1] : vector<7x32xf32> to vector<7xf32>
    %229 = vector.shape_cast %228 : vector<7xf32> to vector<7x1xf32>
    %cst_99 = arith.constant 3.200000e+01 : f32
    %230 = vector.broadcast %cst_99 : f32 to vector<7x1xf32>
    %231 = arith.divf %229, %230 : vector<7x1xf32>
    %232 = vector.broadcast %224 : vector<7x1xf32> to vector<7x32xf32>
    %233 = arith.subf %220, %232 : vector<7x32xf32>
    %cst_100 = arith.constant 9.99999974E-6 : f32
    %234 = vector.broadcast %cst_100 : f32 to vector<7x1xf32>
    %235 = arith.addf %231, %234 : vector<7x1xf32>
    %236 = math.rsqrt %235 : vector<7x1xf32>
    %237 = vector.broadcast %236 : vector<7x1xf32> to vector<7x32xf32>
    %238 = arith.mulf %233, %237 : vector<7x32xf32>
    %239 = vector.broadcast %11 : vector<1x32xf32> to vector<7x32xf32>
    %240 = arith.mulf %238, %239 : vector<7x32xf32>
    %241 = vector.broadcast %13 : vector<1x32xf32> to vector<7x32xf32>
    %242 = arith.addf %240, %241 : vector<7x32xf32>
    %cst_101 = arith.constant 5.000000e-01 : f32
    %243 = vector.broadcast %cst_101 : f32 to vector<7x7xf32>
    %244 = arith.mulf %213, %243 : vector<7x7xf32>
    %c0_102 = arith.constant 0 : index
    %c0_103 = arith.constant 0 : index
    %c0_104 = arith.constant 0 : index
    %245 = vector.load %arg12[%c0_102, %c0_103, %c0_104] : memref<2x7x7xf32, #tpu.memory_space<vmem>>, vector<1x7x7xf32>
    %246 = vector.shape_cast %245 : vector<1x7x7xf32> to vector<7x7xf32>
    %247 = vector.shape_cast %244 : vector<7x7xf32> to vector<1x7x7xf32>
    tpu.vector_store %arg12[%c0_102, %c0_103, %c0_104], %247 {strides = array<i32>} : memref<2x7x7xf32, #tpu.memory_space<vmem>>, vector<1x7x7xf32>,
    %c1_105 = arith.constant 1 : index
    %c0_106 = arith.constant 0 : index
    %c0_107 = arith.constant 0 : index
    %248 = vector.load %arg1[%c1_105, %c0_106, %c0_107] : memref<2x32x96xf32, #tpu.memory_space<vmem>>, vector<1x32x96xf32>
    %249 = vector.shape_cast %248 : vector<1x32x96xf32> to vector<32x96xf32>
    %c1_108 = arith.constant 1 : index
    %c0_109 = arith.constant 0 : index
    %c0_110 = arith.constant 0 : index
    %250 = vector.load %arg3[%c1_108, %c0_109, %c0_110] : memref<2x32x32xf32, #tpu.memory_space<vmem>>, vector<1x32x32xf32>
    %251 = vector.shape_cast %250 : vector<1x32x32xf32> to vector<32x32xf32>
    %c1_111 = arith.constant 1 : index
    %c0_112 = arith.constant 0 : index
    %c0_113 = arith.constant 0 : index
    %252 = vector.load %arg4[%c1_111, %c0_112, %c0_113] : memref<2x1x32xf32, #tpu.memory_space<vmem>>, vector<1x1x32xf32>
    %253 = vector.shape_cast %252 : vector<1x1x32xf32> to vector<1x32xf32>
    %c1_114 = arith.constant 1 : index
    %c0_115 = arith.constant 0 : index
    %c0_116 = arith.constant 0 : index
    %254 = vector.load %arg5[%c1_114, %c0_115, %c0_116] : memref<2x1x32xf32, #tpu.memory_space<vmem>>, vector<1x1x32xf32>
    %255 = vector.shape_cast %254 : vector<1x1x32xf32> to vector<1x32xf32>
    %c1_117 = arith.constant 1 : index
    %c0_118 = arith.constant 0 : index
    %c0_119 = arith.constant 0 : index
    %256 = vector.load %arg6[%c1_117, %c0_118, %c0_119] : memref<2x1x32xf32, #tpu.memory_space<vmem>>, vector<1x1x32xf32>
    %257 = vector.shape_cast %256 : vector<1x1x32xf32> to vector<1x32xf32>
    %cst_120 = arith.constant 0.000000e+00 : f32
    %258 = vector.broadcast %cst_120 : f32 to vector<7x7xf32>
    %cst_121 = arith.constant dense<0.000000e+00> : vector<7x96xf32>
    %259 = tpu.matmul %128, %249, %cst_121 {dimension_numbers = #tpu.dot_dimension_numbers<[1], [0], [0], [1], [0, 0, 1, 1], [], []>} : vector<7x32xf32>, vector<32x96xf32>, vector<7x96xf32> -> vector<7x96xf32>
    %260 = vector.extract_strided_slice %259 {offsets = [0, 0], sizes = [7, 8], strides = [1, 1]} : vector<7x96xf32> to vector<7x8xf32>
    %261 = vector.extract_strided_slice %259 {offsets = [0, 32], sizes = [7, 8], strides = [1, 1]} : vector<7x96xf32> to vector<7x8xf32>
    %262 = vector.extract_strided_slice %259 {offsets = [0, 64], sizes = [7, 8], strides = [1, 1]} : vector<7x96xf32> to vector<7x8xf32>
    %cst_122 = arith.constant dense<0.000000e+00> : vector<7x7xf32>
    %263 = tpu.matmul %260, %261, %cst_122 {dimension_numbers = #tpu.dot_dimension_numbers<[1], [1], [0], [0], [0, 0, 1, 0], [], []>} : vector<7x8xf32>, vector<7x8xf32>, vector<7x7xf32> -> vector<7x7xf32>
    %cst_123 = arith.constant 0.353553385 : f32
    %264 = vector.broadcast %cst_123 : f32 to vector<7x7xf32>
    %265 = arith.mulf %263, %264 : vector<7x7xf32>
    %cst_124 = arith.constant dense<0xFF800000> : vector<7xf32>
    %266 = vector.multi_reduction <maximumf>, %265, %cst_124 [1] : vector<7x7xf32> to vector<7xf32>
    %267 = vector.shape_cast %266 : vector<7xf32> to vector<7x1xf32>
    %268 = vector.broadcast %267 : vector<7x1xf32> to vector<7x7xf32>
    %269 = arith.subf %265, %268 : vector<7x7xf32>
    %270 = math.exp %269 : vector<7x7xf32>
    %cst_125 = arith.constant dense<0.000000e+00> : vector<7xf32>
    %271 = vector.multi_reduction <add>, %270, %cst_125 [1] : vector<7x7xf32> to vector<7xf32>
    %272 = vector.shape_cast %271 : vector<7xf32> to vector<7x1xf32>
    %273 = vector.broadcast %272 : vector<7x1xf32> to vector<7x7xf32>
    %274 = arith.divf %270, %273 : vector<7x7xf32>
    %c4 = arith.constant 4 : index
    %c0_126 = arith.constant 0 : index
    %c0_127 = arith.constant 0 : index
    %275 = vector.load %arg2[%c4, %c0_126, %c0_127] : memref<8x7x7xf32, #tpu.memory_space<vmem>>, vector<1x7x7xf32>
    %276 = vector.shape_cast %275 : vector<1x7x7xf32> to vector<7x7xf32>
    %277 = arith.mulf %276, %274 : vector<7x7xf32>
    %cst_128 = arith.constant dense<0.000000e+00> : vector<7x8xf32>
    %278 = tpu.matmul %277, %262, %cst_128 {dimension_numbers = #tpu.dot_dimension_numbers<[1], [0], [0], [1], [0, 0, 1, 1], [], []>} : vector<7x7xf32>, vector<7x8xf32>, vector<7x8xf32> -> vector<7x8xf32>
    %279 = vector.extract_strided_slice %251 {offsets = [0, 0], sizes = [8, 32], strides = [1, 1]} : vector<32x32xf32> to vector<8x32xf32>
    %cst_129 = arith.constant dense<0.000000e+00> : vector<7x32xf32>
    %280 = tpu.matmul %278, %279, %cst_129 {dimension_numbers = #tpu.dot_dimension_numbers<[1], [0], [0], [1], [0, 0, 1, 1], [], []>} : vector<7x8xf32>, vector<8x32xf32>, vector<7x32xf32> -> vector<7x32xf32>
    %281 = vector.extract_strided_slice %259 {offsets = [0, 8], sizes = [7, 8], strides = [1, 1]} : vector<7x96xf32> to vector<7x8xf32>
    %282 = vector.extract_strided_slice %259 {offsets = [0, 40], sizes = [7, 8], strides = [1, 1]} : vector<7x96xf32> to vector<7x8xf32>
    %283 = vector.extract_strided_slice %259 {offsets = [0, 72], sizes = [7, 8], strides = [1, 1]} : vector<7x96xf32> to vector<7x8xf32>
    %cst_130 = arith.constant dense<0.000000e+00> : vector<7x7xf32>
    %284 = tpu.matmul %281, %282, %cst_130 {dimension_numbers = #tpu.dot_dimension_numbers<[1], [1], [0], [0], [0, 0, 1, 0], [], []>} : vector<7x8xf32>, vector<7x8xf32>, vector<7x7xf32> -> vector<7x7xf32>
    %cst_131 = arith.constant 0.353553385 : f32
    %285 = vector.broadcast %cst_131 : f32 to vector<7x7xf32>
    %286 = arith.mulf %284, %285 : vector<7x7xf32>
    %cst_132 = arith.constant dense<0xFF800000> : vector<7xf32>
    %287 = vector.multi_reduction <maximumf>, %286, %cst_132 [1] : vector<7x7xf32> to vector<7xf32>
    %288 = vector.shape_cast %287 : vector<7xf32> to vector<7x1xf32>
    %289 = vector.broadcast %288 : vector<7x1xf32> to vector<7x7xf32>
    %290 = arith.subf %286, %289 : vector<7x7xf32>
    %291 = math.exp %290 : vector<7x7xf32>
    %cst_133 = arith.constant dense<0.000000e+00> : vector<7xf32>
    %292 = vector.multi_reduction <add>, %291, %cst_133 [1] : vector<7x7xf32> to vector<7xf32>
    %293 = vector.shape_cast %292 : vector<7xf32> to vector<7x1xf32>
    %294 = vector.broadcast %293 : vector<7x1xf32> to vector<7x7xf32>
    %295 = arith.divf %291, %294 : vector<7x7xf32>
    %c5 = arith.constant 5 : index
    %c0_134 = arith.constant 0 : index
    %c0_135 = arith.constant 0 : index
    %296 = vector.load %arg2[%c5, %c0_134, %c0_135] : memref<8x7x7xf32, #tpu.memory_space<vmem>>, vector<1x7x7xf32>
    %297 = vector.shape_cast %296 : vector<1x7x7xf32> to vector<7x7xf32>
    %298 = arith.mulf %297, %295 : vector<7x7xf32>
    %cst_136 = arith.constant dense<0.000000e+00> : vector<7x8xf32>
    %299 = tpu.matmul %298, %283, %cst_136 {dimension_numbers = #tpu.dot_dimension_numbers<[1], [0], [0], [1], [0, 0, 1, 1], [], []>} : vector<7x7xf32>, vector<7x8xf32>, vector<7x8xf32> -> vector<7x8xf32>
    %300 = vector.extract_strided_slice %251 {offsets = [8, 0], sizes = [8, 32], strides = [1, 1]} : vector<32x32xf32> to vector<8x32xf32>
    %cst_137 = arith.constant dense<0.000000e+00> : vector<7x32xf32>
    %301 = tpu.matmul %299, %300, %cst_137 {dimension_numbers = #tpu.dot_dimension_numbers<[1], [0], [0], [1], [0, 0, 1, 1], [], []>} : vector<7x8xf32>, vector<8x32xf32>, vector<7x32xf32> -> vector<7x32xf32>
    %302 = arith.addf %280, %301 : vector<7x32xf32>
    %303 = vector.extract_strided_slice %259 {offsets = [0, 16], sizes = [7, 8], strides = [1, 1]} : vector<7x96xf32> to vector<7x8xf32>
    %304 = vector.extract_strided_slice %259 {offsets = [0, 48], sizes = [7, 8], strides = [1, 1]} : vector<7x96xf32> to vector<7x8xf32>
    %305 = vector.extract_strided_slice %259 {offsets = [0, 80], sizes = [7, 8], strides = [1, 1]} : vector<7x96xf32> to vector<7x8xf32>
    %cst_138 = arith.constant dense<0.000000e+00> : vector<7x7xf32>
    %306 = tpu.matmul %303, %304, %cst_138 {dimension_numbers = #tpu.dot_dimension_numbers<[1], [1], [0], [0], [0, 0, 1, 0], [], []>} : vector<7x8xf32>, vector<7x8xf32>, vector<7x7xf32> -> vector<7x7xf32>
    %cst_139 = arith.constant 0.353553385 : f32
    %307 = vector.broadcast %cst_139 : f32 to vector<7x7xf32>
    %308 = arith.mulf %306, %307 : vector<7x7xf32>
    %cst_140 = arith.constant dense<0xFF800000> : vector<7xf32>
    %309 = vector.multi_reduction <maximumf>, %308, %cst_140 [1] : vector<7x7xf32> to vector<7xf32>
    %310 = vector.shape_cast %309 : vector<7xf32> to vector<7x1xf32>
    %311 = vector.broadcast %310 : vector<7x1xf32> to vector<7x7xf32>
    %312 = arith.subf %308, %311 : vector<7x7xf32>
    %313 = math.exp %312 : vector<7x7xf32>
    %cst_141 = arith.constant dense<0.000000e+00> : vector<7xf32>
    %314 = vector.multi_reduction <add>, %313, %cst_141 [1] : vector<7x7xf32> to vector<7xf32>
    %315 = vector.shape_cast %314 : vector<7xf32> to vector<7x1xf32>
    %316 = vector.broadcast %315 : vector<7x1xf32> to vector<7x7xf32>
    %317 = arith.divf %313, %316 : vector<7x7xf32>
    %c6 = arith.constant 6 : index
    %c0_142 = arith.constant 0 : index
    %c0_143 = arith.constant 0 : index
    %318 = vector.load %arg2[%c6, %c0_142, %c0_143] : memref<8x7x7xf32, #tpu.memory_space<vmem>>, vector<1x7x7xf32>
    %319 = vector.shape_cast %318 : vector<1x7x7xf32> to vector<7x7xf32>
    %320 = arith.mulf %319, %317 : vector<7x7xf32>
    %cst_144 = arith.constant dense<0.000000e+00> : vector<7x8xf32>
    %321 = tpu.matmul %320, %305, %cst_144 {dimension_numbers = #tpu.dot_dimension_numbers<[1], [0], [0], [1], [0, 0, 1, 1], [], []>} : vector<7x7xf32>, vector<7x8xf32>, vector<7x8xf32> -> vector<7x8xf32>
    %322 = vector.extract_strided_slice %251 {offsets = [16, 0], sizes = [8, 32], strides = [1, 1]} : vector<32x32xf32> to vector<8x32xf32>
    %cst_145 = arith.constant dense<0.000000e+00> : vector<7x32xf32>
    %323 = tpu.matmul %321, %322, %cst_145 {dimension_numbers = #tpu.dot_dimension_numbers<[1], [0], [0], [1], [0, 0, 1, 1], [], []>} : vector<7x8xf32>, vector<8x32xf32>, vector<7x32xf32> -> vector<7x32xf32>
    %324 = arith.addf %302, %323 : vector<7x32xf32>
    %325 = vector.extract_strided_slice %259 {offsets = [0, 24], sizes = [7, 8], strides = [1, 1]} : vector<7x96xf32> to vector<7x8xf32>
    %326 = vector.extract_strided_slice %259 {offsets = [0, 56], sizes = [7, 8], strides = [1, 1]} : vector<7x96xf32> to vector<7x8xf32>
    %327 = vector.extract_strided_slice %259 {offsets = [0, 88], sizes = [7, 8], strides = [1, 1]} : vector<7x96xf32> to vector<7x8xf32>
    %cst_146 = arith.constant dense<0.000000e+00> : vector<7x7xf32>
    %328 = tpu.matmul %325, %326, %cst_146 {dimension_numbers = #tpu.dot_dimension_numbers<[1], [1], [0], [0], [0, 0, 1, 0], [], []>} : vector<7x8xf32>, vector<7x8xf32>, vector<7x7xf32> -> vector<7x7xf32>
    %cst_147 = arith.constant 0.353553385 : f32
    %329 = vector.broadcast %cst_147 : f32 to vector<7x7xf32>
    %330 = arith.mulf %328, %329 : vector<7x7xf32>
    %cst_148 = arith.constant dense<0xFF800000> : vector<7xf32>
    %331 = vector.multi_reduction <maximumf>, %330, %cst_148 [1] : vector<7x7xf32> to vector<7xf32>
    %332 = vector.shape_cast %331 : vector<7xf32> to vector<7x1xf32>
    %333 = vector.broadcast %332 : vector<7x1xf32> to vector<7x7xf32>
    %334 = arith.subf %330, %333 : vector<7x7xf32>
    %335 = math.exp %334 : vector<7x7xf32>
    %cst_149 = arith.constant dense<0.000000e+00> : vector<7xf32>
    %336 = vector.multi_reduction <add>, %335, %cst_149 [1] : vector<7x7xf32> to vector<7xf32>
    %337 = vector.shape_cast %336 : vector<7xf32> to vector<7x1xf32>
    %338 = vector.broadcast %337 : vector<7x1xf32> to vector<7x7xf32>
    %339 = arith.divf %335, %338 : vector<7x7xf32>
    %c7 = arith.constant 7 : index
    %c0_150 = arith.constant 0 : index
    %c0_151 = arith.constant 0 : index
    %340 = vector.load %arg2[%c7, %c0_150, %c0_151] : memref<8x7x7xf32, #tpu.memory_space<vmem>>, vector<1x7x7xf32>
    %341 = vector.shape_cast %340 : vector<1x7x7xf32> to vector<7x7xf32>
    %342 = arith.mulf %341, %339 : vector<7x7xf32>
    %343 = arith.addf %258, %342 : vector<7x7xf32>
    %cst_152 = arith.constant dense<0.000000e+00> : vector<7x8xf32>
    %344 = tpu.matmul %342, %327, %cst_152 {dimension_numbers = #tpu.dot_dimension_numbers<[1], [0], [0], [1], [0, 0, 1, 1], [], []>} : vector<7x7xf32>, vector<7x8xf32>, vector<7x8xf32> -> vector<7x8xf32>
    %345 = vector.extract_strided_slice %251 {offsets = [24, 0], sizes = [8, 32], strides = [1, 1]} : vector<32x32xf32> to vector<8x32xf32>
    %cst_153 = arith.constant dense<0.000000e+00> : vector<7x32xf32>
    %346 = tpu.matmul %344, %345, %cst_153 {dimension_numbers = #tpu.dot_dimension_numbers<[1], [0], [0], [1], [0, 0, 1, 1], [], []>} : vector<7x8xf32>, vector<8x32xf32>, vector<7x32xf32> -> vector<7x32xf32>
    %347 = arith.addf %324, %346 : vector<7x32xf32>
    %348 = vector.broadcast %253 : vector<1x32xf32> to vector<7x32xf32>
    %349 = arith.addf %347, %348 : vector<7x32xf32>
    %350 = arith.addf %349, %128 : vector<7x32xf32>
    %cst_154 = arith.constant dense<0.000000e+00> : vector<7xf32>
    %351 = vector.multi_reduction <add>, %350, %cst_154 [1] : vector<7x32xf32> to vector<7xf32>
    %352 = vector.shape_cast %351 : vector<7xf32> to vector<7x1xf32>
    %cst_155 = arith.constant 3.200000e+01 : f32
    %353 = vector.broadcast %cst_155 : f32 to vector<7x1xf32>
    %354 = arith.divf %352, %353 : vector<7x1xf32>
    %355 = vector.broadcast %354 : vector<7x1xf32> to vector<7x32xf32>
    %356 = arith.subf %350, %355 : vector<7x32xf32>
    %357 = arith.mulf %356, %356 : vector<7x32xf32>
    %cst_156 = arith.constant dense<0.000000e+00> : vector<7xf32>
    %358 = vector.multi_reduction <add>, %357, %cst_156 [1] : vector<7x32xf32> to vector<7xf32>
    %359 = vector.shape_cast %358 : vector<7xf32> to vector<7x1xf32>
    %cst_157 = arith.constant 3.200000e+01 : f32
    %360 = vector.broadcast %cst_157 : f32 to vector<7x1xf32>
    %361 = arith.divf %359, %360 : vector<7x1xf32>
    %362 = vector.broadcast %354 : vector<7x1xf32> to vector<7x32xf32>
    %363 = arith.subf %350, %362 : vector<7x32xf32>
    %cst_158 = arith.constant 9.99999974E-6 : f32
    %364 = vector.broadcast %cst_158 : f32 to vector<7x1xf32>
    %365 = arith.addf %361, %364 : vector<7x1xf32>
    %366 = math.rsqrt %365 : vector<7x1xf32>
    %367 = vector.broadcast %366 : vector<7x1xf32> to vector<7x32xf32>
    %368 = arith.mulf %363, %367 : vector<7x32xf32>
    %369 = vector.broadcast %255 : vector<1x32xf32> to vector<7x32xf32>
    %370 = arith.mulf %368, %369 : vector<7x32xf32>
    %371 = vector.broadcast %257 : vector<1x32xf32> to vector<7x32xf32>
    %372 = arith.addf %370, %371 : vector<7x32xf32>
    %cst_159 = arith.constant dense<0.000000e+00> : vector<7x96xf32>
    %373 = tpu.matmul %242, %249, %cst_159 {dimension_numbers = #tpu.dot_dimension_numbers<[1], [0], [0], [1], [0, 0, 1, 1], [], []>} : vector<7x32xf32>, vector<32x96xf32>, vector<7x96xf32> -> vector<7x96xf32>
    %374 = vector.extract_strided_slice %373 {offsets = [0, 0], sizes = [7, 8], strides = [1, 1]} : vector<7x96xf32> to vector<7x8xf32>
    %375 = vector.extract_strided_slice %373 {offsets = [0, 32], sizes = [7, 8], strides = [1, 1]} : vector<7x96xf32> to vector<7x8xf32>
    %376 = vector.extract_strided_slice %373 {offsets = [0, 64], sizes = [7, 8], strides = [1, 1]} : vector<7x96xf32> to vector<7x8xf32>
    %cst_160 = arith.constant dense<0.000000e+00> : vector<7x7xf32>
    %377 = tpu.matmul %374, %375, %cst_160 {dimension_numbers = #tpu.dot_dimension_numbers<[1], [1], [0], [0], [0, 0, 1, 0], [], []>} : vector<7x8xf32>, vector<7x8xf32>, vector<7x7xf32> -> vector<7x7xf32>
    %cst_161 = arith.constant 0.353553385 : f32
    %378 = vector.broadcast %cst_161 : f32 to vector<7x7xf32>
    %379 = arith.mulf %377, %378 : vector<7x7xf32>
    %cst_162 = arith.constant dense<0xFF800000> : vector<7xf32>
    %380 = vector.multi_reduction <maximumf>, %379, %cst_162 [1] : vector<7x7xf32> to vector<7xf32>
    %381 = vector.shape_cast %380 : vector<7xf32> to vector<7x1xf32>
    %382 = vector.broadcast %381 : vector<7x1xf32> to vector<7x7xf32>
    %383 = arith.subf %379, %382 : vector<7x7xf32>
    %384 = math.exp %383 : vector<7x7xf32>
    %cst_163 = arith.constant dense<0.000000e+00> : vector<7xf32>
    %385 = vector.multi_reduction <add>, %384, %cst_163 [1] : vector<7x7xf32> to vector<7xf32>
    %386 = vector.shape_cast %385 : vector<7xf32> to vector<7x1xf32>
    %387 = vector.broadcast %386 : vector<7x1xf32> to vector<7x7xf32>
    %388 = arith.divf %384, %387 : vector<7x7xf32>
    %c4_164 = arith.constant 4 : index
    %c0_165 = arith.constant 0 : index
    %c0_166 = arith.constant 0 : index
    %389 = vector.load %arg2[%c4_164, %c0_165, %c0_166] : memref<8x7x7xf32, #tpu.memory_space<vmem>>, vector<1x7x7xf32>
    %390 = vector.shape_cast %389 : vector<1x7x7xf32> to vector<7x7xf32>
    %391 = arith.mulf %390, %388 : vector<7x7xf32>
    %cst_167 = arith.constant dense<0.000000e+00> : vector<7x8xf32>
    %392 = tpu.matmul %391, %376, %cst_167 {dimension_numbers = #tpu.dot_dimension_numbers<[1], [0], [0], [1], [0, 0, 1, 1], [], []>} : vector<7x7xf32>, vector<7x8xf32>, vector<7x8xf32> -> vector<7x8xf32>
    %393 = vector.extract_strided_slice %251 {offsets = [0, 0], sizes = [8, 32], strides = [1, 1]} : vector<32x32xf32> to vector<8x32xf32>
    %cst_168 = arith.constant dense<0.000000e+00> : vector<7x32xf32>
    %394 = tpu.matmul %392, %393, %cst_168 {dimension_numbers = #tpu.dot_dimension_numbers<[1], [0], [0], [1], [0, 0, 1, 1], [], []>} : vector<7x8xf32>, vector<8x32xf32>, vector<7x32xf32> -> vector<7x32xf32>
    %395 = vector.extract_strided_slice %373 {offsets = [0, 8], sizes = [7, 8], strides = [1, 1]} : vector<7x96xf32> to vector<7x8xf32>
    %396 = vector.extract_strided_slice %373 {offsets = [0, 40], sizes = [7, 8], strides = [1, 1]} : vector<7x96xf32> to vector<7x8xf32>
    %397 = vector.extract_strided_slice %373 {offsets = [0, 72], sizes = [7, 8], strides = [1, 1]} : vector<7x96xf32> to vector<7x8xf32>
    %cst_169 = arith.constant dense<0.000000e+00> : vector<7x7xf32>
    %398 = tpu.matmul %395, %396, %cst_169 {dimension_numbers = #tpu.dot_dimension_numbers<[1], [1], [0], [0], [0, 0, 1, 0], [], []>} : vector<7x8xf32>, vector<7x8xf32>, vector<7x7xf32> -> vector<7x7xf32>
    %cst_170 = arith.constant 0.353553385 : f32
    %399 = vector.broadcast %cst_170 : f32 to vector<7x7xf32>
    %400 = arith.mulf %398, %399 : vector<7x7xf32>
    %cst_171 = arith.constant dense<0xFF800000> : vector<7xf32>
    %401 = vector.multi_reduction <maximumf>, %400, %cst_171 [1] : vector<7x7xf32> to vector<7xf32>
    %402 = vector.shape_cast %401 : vector<7xf32> to vector<7x1xf32>
    %403 = vector.broadcast %402 : vector<7x1xf32> to vector<7x7xf32>
    %404 = arith.subf %400, %403 : vector<7x7xf32>
    %405 = math.exp %404 : vector<7x7xf32>
    %cst_172 = arith.constant dense<0.000000e+00> : vector<7xf32>
    %406 = vector.multi_reduction <add>, %405, %cst_172 [1] : vector<7x7xf32> to vector<7xf32>
    %407 = vector.shape_cast %406 : vector<7xf32> to vector<7x1xf32>
    %408 = vector.broadcast %407 : vector<7x1xf32> to vector<7x7xf32>
    %409 = arith.divf %405, %408 : vector<7x7xf32>
    %c5_173 = arith.constant 5 : index
    %c0_174 = arith.constant 0 : index
    %c0_175 = arith.constant 0 : index
    %410 = vector.load %arg2[%c5_173, %c0_174, %c0_175] : memref<8x7x7xf32, #tpu.memory_space<vmem>>, vector<1x7x7xf32>
    %411 = vector.shape_cast %410 : vector<1x7x7xf32> to vector<7x7xf32>
    %412 = arith.mulf %411, %409 : vector<7x7xf32>
    %cst_176 = arith.constant dense<0.000000e+00> : vector<7x8xf32>
    %413 = tpu.matmul %412, %397, %cst_176 {dimension_numbers = #tpu.dot_dimension_numbers<[1], [0], [0], [1], [0, 0, 1, 1], [], []>} : vector<7x7xf32>, vector<7x8xf32>, vector<7x8xf32> -> vector<7x8xf32>
    %414 = vector.extract_strided_slice %251 {offsets = [8, 0], sizes = [8, 32], strides = [1, 1]} : vector<32x32xf32> to vector<8x32xf32>
    %cst_177 = arith.constant dense<0.000000e+00> : vector<7x32xf32>
    %415 = tpu.matmul %413, %414, %cst_177 {dimension_numbers = #tpu.dot_dimension_numbers<[1], [0], [0], [1], [0, 0, 1, 1], [], []>} : vector<7x8xf32>, vector<8x32xf32>, vector<7x32xf32> -> vector<7x32xf32>
    %416 = arith.addf %394, %415 : vector<7x32xf32>
    %417 = vector.extract_strided_slice %373 {offsets = [0, 16], sizes = [7, 8], strides = [1, 1]} : vector<7x96xf32> to vector<7x8xf32>
    %418 = vector.extract_strided_slice %373 {offsets = [0, 48], sizes = [7, 8], strides = [1, 1]} : vector<7x96xf32> to vector<7x8xf32>
    %419 = vector.extract_strided_slice %373 {offsets = [0, 80], sizes = [7, 8], strides = [1, 1]} : vector<7x96xf32> to vector<7x8xf32>
    %cst_178 = arith.constant dense<0.000000e+00> : vector<7x7xf32>
    %420 = tpu.matmul %417, %418, %cst_178 {dimension_numbers = #tpu.dot_dimension_numbers<[1], [1], [0], [0], [0, 0, 1, 0], [], []>} : vector<7x8xf32>, vector<7x8xf32>, vector<7x7xf32> -> vector<7x7xf32>
    %cst_179 = arith.constant 0.353553385 : f32
    %421 = vector.broadcast %cst_179 : f32 to vector<7x7xf32>
    %422 = arith.mulf %420, %421 : vector<7x7xf32>
    %cst_180 = arith.constant dense<0xFF800000> : vector<7xf32>
    %423 = vector.multi_reduction <maximumf>, %422, %cst_180 [1] : vector<7x7xf32> to vector<7xf32>
    %424 = vector.shape_cast %423 : vector<7xf32> to vector<7x1xf32>
    %425 = vector.broadcast %424 : vector<7x1xf32> to vector<7x7xf32>
    %426 = arith.subf %422, %425 : vector<7x7xf32>
    %427 = math.exp %426 : vector<7x7xf32>
    %cst_181 = arith.constant dense<0.000000e+00> : vector<7xf32>
    %428 = vector.multi_reduction <add>, %427, %cst_181 [1] : vector<7x7xf32> to vector<7xf32>
    %429 = vector.shape_cast %428 : vector<7xf32> to vector<7x1xf32>
    %430 = vector.broadcast %429 : vector<7x1xf32> to vector<7x7xf32>
    %431 = arith.divf %427, %430 : vector<7x7xf32>
    %c6_182 = arith.constant 6 : index
    %c0_183 = arith.constant 0 : index
    %c0_184 = arith.constant 0 : index
    %432 = vector.load %arg2[%c6_182, %c0_183, %c0_184] : memref<8x7x7xf32, #tpu.memory_space<vmem>>, vector<1x7x7xf32>
    %433 = vector.shape_cast %432 : vector<1x7x7xf32> to vector<7x7xf32>
    %434 = arith.mulf %433, %431 : vector<7x7xf32>
    %cst_185 = arith.constant dense<0.000000e+00> : vector<7x8xf32>
    %435 = tpu.matmul %434, %419, %cst_185 {dimension_numbers = #tpu.dot_dimension_numbers<[1], [0], [0], [1], [0, 0, 1, 1], [], []>} : vector<7x7xf32>, vector<7x8xf32>, vector<7x8xf32> -> vector<7x8xf32>
    %436 = vector.extract_strided_slice %251 {offsets = [16, 0], sizes = [8, 32], strides = [1, 1]} : vector<32x32xf32> to vector<8x32xf32>
    %cst_186 = arith.constant dense<0.000000e+00> : vector<7x32xf32>
    %437 = tpu.matmul %435, %436, %cst_186 {dimension_numbers = #tpu.dot_dimension_numbers<[1], [0], [0], [1], [0, 0, 1, 1], [], []>} : vector<7x8xf32>, vector<8x32xf32>, vector<7x32xf32> -> vector<7x32xf32>
    %438 = arith.addf %416, %437 : vector<7x32xf32>
    %439 = vector.extract_strided_slice %373 {offsets = [0, 24], sizes = [7, 8], strides = [1, 1]} : vector<7x96xf32> to vector<7x8xf32>
    %440 = vector.extract_strided_slice %373 {offsets = [0, 56], sizes = [7, 8], strides = [1, 1]} : vector<7x96xf32> to vector<7x8xf32>
    %441 = vector.extract_strided_slice %373 {offsets = [0, 88], sizes = [7, 8], strides = [1, 1]} : vector<7x96xf32> to vector<7x8xf32>
    %cst_187 = arith.constant dense<0.000000e+00> : vector<7x7xf32>
    %442 = tpu.matmul %439, %440, %cst_187 {dimension_numbers = #tpu.dot_dimension_numbers<[1], [1], [0], [0], [0, 0, 1, 0], [], []>} : vector<7x8xf32>, vector<7x8xf32>, vector<7x7xf32> -> vector<7x7xf32>
    %cst_188 = arith.constant 0.353553385 : f32
    %443 = vector.broadcast %cst_188 : f32 to vector<7x7xf32>
    %444 = arith.mulf %442, %443 : vector<7x7xf32>
    %cst_189 = arith.constant dense<0xFF800000> : vector<7xf32>
    %445 = vector.multi_reduction <maximumf>, %444, %cst_189 [1] : vector<7x7xf32> to vector<7xf32>
    %446 = vector.shape_cast %445 : vector<7xf32> to vector<7x1xf32>
    %447 = vector.broadcast %446 : vector<7x1xf32> to vector<7x7xf32>
    %448 = arith.subf %444, %447 : vector<7x7xf32>
    %449 = math.exp %448 : vector<7x7xf32>
    %cst_190 = arith.constant dense<0.000000e+00> : vector<7xf32>
    %450 = vector.multi_reduction <add>, %449, %cst_190 [1] : vector<7x7xf32> to vector<7xf32>
    %451 = vector.shape_cast %450 : vector<7xf32> to vector<7x1xf32>
    %452 = vector.broadcast %451 : vector<7x1xf32> to vector<7x7xf32>
    %453 = arith.divf %449, %452 : vector<7x7xf32>
    %c7_191 = arith.constant 7 : index
    %c0_192 = arith.constant 0 : index
    %c0_193 = arith.constant 0 : index
    %454 = vector.load %arg2[%c7_191, %c0_192, %c0_193] : memref<8x7x7xf32, #tpu.memory_space<vmem>>, vector<1x7x7xf32>
    %455 = vector.shape_cast %454 : vector<1x7x7xf32> to vector<7x7xf32>
    %456 = arith.mulf %455, %453 : vector<7x7xf32>
    %457 = arith.addf %343, %456 : vector<7x7xf32>
    %cst_194 = arith.constant dense<0.000000e+00> : vector<7x8xf32>
    %458 = tpu.matmul %456, %441, %cst_194 {dimension_numbers = #tpu.dot_dimension_numbers<[1], [0], [0], [1], [0, 0, 1, 1], [], []>} : vector<7x7xf32>, vector<7x8xf32>, vector<7x8xf32> -> vector<7x8xf32>
    %459 = vector.extract_strided_slice %251 {offsets = [24, 0], sizes = [8, 32], strides = [1, 1]} : vector<32x32xf32> to vector<8x32xf32>
    %cst_195 = arith.constant dense<0.000000e+00> : vector<7x32xf32>
    %460 = tpu.matmul %458, %459, %cst_195 {dimension_numbers = #tpu.dot_dimension_numbers<[1], [0], [0], [1], [0, 0, 1, 1], [], []>} : vector<7x8xf32>, vector<8x32xf32>, vector<7x32xf32> -> vector<7x32xf32>
    %461 = arith.addf %438, %460 : vector<7x32xf32>
    %462 = vector.broadcast %253 : vector<1x32xf32> to vector<7x32xf32>
    %463 = arith.addf %461, %462 : vector<7x32xf32>
    %464 = arith.addf %463, %242 : vector<7x32xf32>
    %cst_196 = arith.constant dense<0.000000e+00> : vector<7xf32>
    %465 = vector.multi_reduction <add>, %464, %cst_196 [1] : vector<7x32xf32> to vector<7xf32>
    %466 = vector.shape_cast %465 : vector<7xf32> to vector<7x1xf32>
    %cst_197 = arith.constant 3.200000e+01 : f32
    %467 = vector.broadcast %cst_197 : f32 to vector<7x1xf32>
    %468 = arith.divf %466, %467 : vector<7x1xf32>
    %469 = vector.broadcast %468 : vector<7x1xf32> to vector<7x32xf32>
    %470 = arith.subf %464, %469 : vector<7x32xf32>
    %471 = arith.mulf %470, %470 : vector<7x32xf32>
    %cst_198 = arith.constant dense<0.000000e+00> : vector<7xf32>
    %472 = vector.multi_reduction <add>, %471, %cst_198 [1] : vector<7x32xf32> to vector<7xf32>
    %473 = vector.shape_cast %472 : vector<7xf32> to vector<7x1xf32>
    %cst_199 = arith.constant 3.200000e+01 : f32
    %474 = vector.broadcast %cst_199 : f32 to vector<7x1xf32>
    %475 = arith.divf %473, %474 : vector<7x1xf32>
    %476 = vector.broadcast %468 : vector<7x1xf32> to vector<7x32xf32>
    %477 = arith.subf %464, %476 : vector<7x32xf32>
    %cst_200 = arith.constant 9.99999974E-6 : f32
    %478 = vector.broadcast %cst_200 : f32 to vector<7x1xf32>
    %479 = arith.addf %475, %478 : vector<7x1xf32>
    %480 = math.rsqrt %479 : vector<7x1xf32>
    %481 = vector.broadcast %480 : vector<7x1xf32> to vector<7x32xf32>
    %482 = arith.mulf %477, %481 : vector<7x32xf32>
    %483 = vector.broadcast %255 : vector<1x32xf32> to vector<7x32xf32>
    %484 = arith.mulf %482, %483 : vector<7x32xf32>
    %485 = vector.broadcast %257 : vector<1x32xf32> to vector<7x32xf32>
    %486 = arith.addf %484, %485 : vector<7x32xf32>
    %cst_201 = arith.constant 5.000000e-01 : f32
    %487 = vector.broadcast %cst_201 : f32 to vector<7x7xf32>
    %488 = arith.mulf %457, %487 : vector<7x7xf32>
    %c1_202 = arith.constant 1 : index
    %c0_203 = arith.constant 0 : index
    %c0_204 = arith.constant 0 : index
    %489 = vector.load %arg12[%c1_202, %c0_203, %c0_204] : memref<2x7x7xf32, #tpu.memory_space<vmem>>, vector<1x7x7xf32>
    %490 = vector.shape_cast %489 : vector<1x7x7xf32> to vector<7x7xf32>
    %491 = vector.shape_cast %488 : vector<7x7xf32> to vector<1x7x7xf32>
    tpu.vector_store %arg12[%c1_202, %c0_203, %c0_204], %491 {strides = array<i32>} : memref<2x7x7xf32, #tpu.memory_space<vmem>>, vector<1x7x7xf32>,
    %c0_205 = arith.constant 0 : index
    %c0_206 = arith.constant 0 : index
    %c0_207 = arith.constant 0 : index
    %492 = vector.load %arg13[%c0_205, %c0_206, %c0_207] : memref<2x7x32xf32, #tpu.memory_space<vmem>>, vector<1x7x32xf32>
    %493 = vector.shape_cast %492 : vector<1x7x32xf32> to vector<7x32xf32>
    %494 = vector.shape_cast %349 : vector<7x32xf32> to vector<1x7x32xf32>
    tpu.vector_store %arg13[%c0_205, %c0_206, %c0_207], %494 {strides = array<i32>} : memref<2x7x32xf32, #tpu.memory_space<vmem>>, vector<1x7x32xf32>,
    %c1_208 = arith.constant 1 : index
    %c0_209 = arith.constant 0 : index
    %c0_210 = arith.constant 0 : index
    %495 = vector.load %arg13[%c1_208, %c0_209, %c0_210] : memref<2x7x32xf32, #tpu.memory_space<vmem>>, vector<1x7x32xf32>
    %496 = vector.shape_cast %495 : vector<1x7x32xf32> to vector<7x32xf32>
    %497 = vector.shape_cast %463 : vector<7x32xf32> to vector<1x7x32xf32>
    tpu.vector_store %arg13[%c1_208, %c0_209, %c0_210], %497 {strides = array<i32>} : memref<2x7x32xf32, #tpu.memory_space<vmem>>, vector<1x7x32xf32>,
    %c0_211 = arith.constant 0 : index
    %c0_212 = arith.constant 0 : index
    %498 = vector.load %arg7[%c0_211, %c0_212] : memref<32x32xf32, #tpu.memory_space<vmem>>, vector<32x32xf32>
    %c0_213 = arith.constant 0 : index
    %c0_214 = arith.constant 0 : index
    %499 = vector.load %arg8[%c0_213, %c0_214] : memref<1x32xf32, #tpu.memory_space<vmem>>, vector<1x32xf32>
    %c0_215 = arith.constant 0 : index
    %c0_216 = arith.constant 0 : index
    %500 = vector.load %arg9[%c0_215, %c0_216] : memref<1x32xf32, #tpu.memory_space<vmem>>, vector<1x32xf32>
    %c0_217 = arith.constant 0 : index
    %c0_218 = arith.constant 0 : index
    %501 = vector.load %arg10[%c0_217, %c0_218] : memref<1x32xf32, #tpu.memory_space<vmem>>, vector<1x32xf32>
    %cst_219 = arith.constant dense<0.000000e+00> : vector<7x32xf32>
    %502 = tpu.matmul %372, %498, %cst_219 {dimension_numbers = #tpu.dot_dimension_numbers<[1], [0], [0], [1], [0, 0, 1, 1], [], []>} : vector<7x32xf32>, vector<32x32xf32>, vector<7x32xf32> -> vector<7x32xf32>
    %503 = vector.broadcast %499 : vector<1x32xf32> to vector<7x32xf32>
    %504 = arith.addf %502, %503 : vector<7x32xf32>
    %505 = arith.addf %504, %1 : vector<7x32xf32>
    %cst_220 = arith.constant dense<0.000000e+00> : vector<7xf32>
    %506 = vector.multi_reduction <add>, %505, %cst_220 [1] : vector<7x32xf32> to vector<7xf32>
    %507 = vector.shape_cast %506 : vector<7xf32> to vector<7x1xf32>
    %cst_221 = arith.constant 3.200000e+01 : f32
    %508 = vector.broadcast %cst_221 : f32 to vector<7x1xf32>
    %509 = arith.divf %507, %508 : vector<7x1xf32>
    %510 = vector.broadcast %509 : vector<7x1xf32> to vector<7x32xf32>
    %511 = arith.subf %505, %510 : vector<7x32xf32>
    %512 = arith.mulf %511, %511 : vector<7x32xf32>
    %cst_222 = arith.constant dense<0.000000e+00> : vector<7xf32>
    %513 = vector.multi_reduction <add>, %512, %cst_222 [1] : vector<7x32xf32> to vector<7xf32>
    %514 = vector.shape_cast %513 : vector<7xf32> to vector<7x1xf32>
    %cst_223 = arith.constant 3.200000e+01 : f32
    %515 = vector.broadcast %cst_223 : f32 to vector<7x1xf32>
    %516 = arith.divf %514, %515 : vector<7x1xf32>
    %517 = vector.broadcast %509 : vector<7x1xf32> to vector<7x32xf32>
    %518 = arith.subf %505, %517 : vector<7x32xf32>
    %cst_224 = arith.constant 9.99999974E-6 : f32
    %519 = vector.broadcast %cst_224 : f32 to vector<7x1xf32>
    %520 = arith.addf %516, %519 : vector<7x1xf32>
    %521 = math.rsqrt %520 : vector<7x1xf32>
    %522 = vector.broadcast %521 : vector<7x1xf32> to vector<7x32xf32>
    %523 = arith.mulf %518, %522 : vector<7x32xf32>
    %524 = vector.broadcast %500 : vector<1x32xf32> to vector<7x32xf32>
    %525 = arith.mulf %523, %524 : vector<7x32xf32>
    %526 = vector.broadcast %501 : vector<1x32xf32> to vector<7x32xf32>
    %527 = arith.addf %525, %526 : vector<7x32xf32>
    %cst_225 = arith.constant dense<0.000000e+00> : vector<7x32xf32>
    %528 = tpu.matmul %486, %498, %cst_225 {dimension_numbers = #tpu.dot_dimension_numbers<[1], [0], [0], [1], [0, 0, 1, 1], [], []>} : vector<7x32xf32>, vector<32x32xf32>, vector<7x32xf32> -> vector<7x32xf32>
    %529 = vector.broadcast %499 : vector<1x32xf32> to vector<7x32xf32>
    %530 = arith.addf %528, %529 : vector<7x32xf32>
    %531 = arith.addf %530, %3 : vector<7x32xf32>
    %cst_226 = arith.constant dense<0.000000e+00> : vector<7xf32>
    %532 = vector.multi_reduction <add>, %531, %cst_226 [1] : vector<7x32xf32> to vector<7xf32>
    %533 = vector.shape_cast %532 : vector<7xf32> to vector<7x1xf32>
    %cst_227 = arith.constant 3.200000e+01 : f32
    %534 = vector.broadcast %cst_227 : f32 to vector<7x1xf32>
    %535 = arith.divf %533, %534 : vector<7x1xf32>
    %536 = vector.broadcast %535 : vector<7x1xf32> to vector<7x32xf32>
    %537 = arith.subf %531, %536 : vector<7x32xf32>
    %538 = arith.mulf %537, %537 : vector<7x32xf32>
    %cst_228 = arith.constant dense<0.000000e+00> : vector<7xf32>
    %539 = vector.multi_reduction <add>, %538, %cst_228 [1] : vector<7x32xf32> to vector<7xf32>
    %540 = vector.shape_cast %539 : vector<7xf32> to vector<7x1xf32>
    %cst_229 = arith.constant 3.200000e+01 : f32
    %541 = vector.broadcast %cst_229 : f32 to vector<7x1xf32>
    %542 = arith.divf %540, %541 : vector<7x1xf32>
    %543 = vector.broadcast %535 : vector<7x1xf32> to vector<7x32xf32>
    %544 = arith.subf %531, %543 : vector<7x32xf32>
    %cst_230 = arith.constant 9.99999974E-6 : f32
    %545 = vector.broadcast %cst_230 : f32 to vector<7x1xf32>
    %546 = arith.addf %542, %545 : vector<7x1xf32>
    %547 = math.rsqrt %546 : vector<7x1xf32>
    %548 = vector.broadcast %547 : vector<7x1xf32> to vector<7x32xf32>
    %549 = arith.mulf %544, %548 : vector<7x32xf32>
    %550 = vector.broadcast %500 : vector<1x32xf32> to vector<7x32xf32>
    %551 = arith.mulf %549, %550 : vector<7x32xf32>
    %552 = vector.broadcast %501 : vector<1x32xf32> to vector<7x32xf32>
    %553 = arith.addf %551, %552 : vector<7x32xf32>
    %c0_231 = arith.constant 0 : index
    %c0_232 = arith.constant 0 : index
    %c0_233 = arith.constant 0 : index
    %554 = vector.load %arg11[%c0_231, %c0_232, %c0_233] : memref<2x7x32xf32, #tpu.memory_space<vmem>>, vector<1x7x32xf32>
    %555 = vector.shape_cast %554 : vector<1x7x32xf32> to vector<7x32xf32>
    %556 = vector.shape_cast %527 : vector<7x32xf32> to vector<1x7x32xf32>
    tpu.vector_store %arg11[%c0_231, %c0_232, %c0_233], %556 {strides = array<i32>} : memref<2x7x32xf32, #tpu.memory_space<vmem>>, vector<1x7x32xf32>,
    %c1_234 = arith.constant 1 : index
    %c0_235 = arith.constant 0 : index
    %c0_236 = arith.constant 0 : index
    %557 = vector.load %arg11[%c1_234, %c0_235, %c0_236] : memref<2x7x32xf32, #tpu.memory_space<vmem>>, vector<1x7x32xf32>
    %558 = vector.shape_cast %557 : vector<1x7x32xf32> to vector<7x32xf32>
    %559 = vector.shape_cast %553 : vector<7x32xf32> to vector<1x7x32xf32>
    tpu.vector_store %arg11[%c1_234, %c0_235, %c0_236], %559 {strides = array<i32>} : memref<2x7x32xf32, #tpu.memory_space<vmem>>, vector<1x7x32xf32>,
    return
  }
}

</mosaic_0001>

<bundles_post_ra>
// kernel: tpu_custom_call.1
= control target key start
LH: loop header
LB: loop body
LE: loop exit
PB: predicated region body
PF: predicated region fallthrough
CT: control target
= control target key end

     0   :  { %v5256_v0 = vmov 0.0|0.0   ;;  %vm5257_vm0 = vmmov 0   ;;  %v5258_v4 = vmov 0.0   ;;  %vm55_vm1 = vcmask 261120   ;;  %s5259_s18 = smov 120   ;;  %s5260_s19 = smov 96   ;;  %s6021_s1 = inlined_call_operand.vmem [shape: f32[2,32,96], index: 1, kind: input, shape index: {}]   ;;  %s6022_s0 = inlined_call_operand.vmem [shape: f32[2,7,32], index: 0, kind: input, shape index: {}]   ;;  %s6023_s3 = inlined_call_operand.vmem [shape: f32[2,32,32], index: 3, kind: input, shape index: {}]   ;;  %s6024_s2 = inlined_call_operand.vmem [shape: f32[8,7,7], index: 2, kind: input, shape index: {}]   ;;  %s6025_s4 = inlined_call_operand.vmem [shape: f32[2,1,32], index: 4, kind: input, shape index: {}]   ;;  %s6026_s5 = inlined_call_operand.vmem [shape: f32[2,1,32], index: 5, kind: input, shape index: {}]   ;;  %s6027_s6 = inlined_call_operand.vmem [shape: f32[2,1,32], index: 6, kind: input, shape index: {}]   ;;  %s6028_s12 = inlined_call_operand.vmem [shape: f32[2,7,7], index: 12, kind: output, shape index: {1}]   ;;  %s6029_s13 = inlined_call_operand.vmem [shape: f32[2,7,32], index: 13, kind: output, shape index: {2}]   ;;  %s6030_s7 = inlined_call_operand.vmem [shape: f32[32,32], index: 7, kind: input, shape index: {}]   ;;  %s6031_s8 = inlined_call_operand.vmem [shape: f32[1,32], index: 8, kind: input, shape index: {}]   ;;  %s6032_s9 = inlined_call_operand.vmem [shape: f32[1,32], index: 9, kind: input, shape index: {}]   ;;  %s6033_s10 = inlined_call_operand.vmem [shape: f32[1,32], index: 10, kind: input, shape index: {}]   ;;  %s6034_s11 = inlined_call_operand.vmem [shape: f32[2,7,32], index: 11, kind: output, shape index: {0}]  }
   0x1   :  { %5128 = vmatprep.subr.bf16.mxu0 %v5256_v0  ;;  %v44_v1 = vld [vmem:[%s6021_s1] sm:$0xff]  ;;  %v45_v2 = vld [vmem:[%s6021_s1 + $0x8] sm:$0xff]  ;;  %v46_v3 = vld [vmem:[%s6021_s1 + $0x10] sm:$0xff]  ;;  %4830 = vmatprep.mubr.msk.f32.mxu0 %vm5257_vm0, %v5258_v4  ;;  %s5261_s20 = smov 88   ;;  %vm132_vm2 = vcmask 64512   ;;  %vm208_vm3 = vcmask 55296  }
   0x2   :  { %v5352_v5 = vpack.c.bf16 %v45_v2, %v44_v1  ;;  %v47_v6 = vld [vmem:[%s6021_s1 + $0x18] sm:$0xff]  ;;  %4833 = vmatprep.subr.mxu1 %v5258_v4  ;;  %4835 = vmatprep.mubr.msk.f32.mxu1 %vm5257_vm0, %v5258_v4  ;;  %v5368_v8 = vld [vmem:[%s6022_s0] sm:$0x7f]  ;;  %s5262_s21 = smov 56   ;;  %s5263_s22 = smov 64   ;;  %v5409_v32 = vld [vmem:[%s6023_s3 + $0x8] sm:$0xff] }
   0x3   :  { %v5361_v7 = vpack.c.bf16 %v47_v6, %v46_v3  ;;  %s5264_s23 = smov 80   ;;  %s5265_s24 = smov 112   ;;  %vm228_vm4 = vcmask 1046528   ;;  %v5418_v37 = vld [vmem:[%s6024_s2] sm:$0x7f]  ;;  %vm224_vm5 = vcmask 56320  }
   0x4   :  { %5130 = vmatpush3.bf16.msra.mxu0 %v5352_v5  ;;  %v5424_v41 = vld [vmem:[%s6024_s2 + $0x8] sm:$0x7f]  ;;  %v5438_v45 = vld [vmem:[%s6023_s3] sm:$0xff]  ;;  %s5266_s16 = smov 72   ;;  %s5267_s17 = smov 104   ;;  %vm1114_vm6 = vcmask 260096  }
   0x5   :  { %5131 = vmatprep.subr.bf16.mxu0 %v5256_v0  ;;  %s6035_s25 = smov 48   ;;  %s6037_s30 = smov 40  }
   0x6   :  { %s6039_s28 = smov 40   ;;  %s6040_s29 = smov 48  }
   0x8   :  { %5133 = vmatpush3.bf16.msra.mxu0 %v5361_v7 }
   0x9   :  { %4843 = vmatprep.subr.mxu0 %v5258_v4 }
   0xb   :  { %4831 = vmatmul.mubr.msk.f32.vlgmr.msra.gmra.mrb[0].mxu0 %vm55_vm1, %v5368_v8 }
   0xc   :  { %4845 = vmatprep.mubr.msk.f32.mxu0 %vm5257_vm0, %v5258_v4 }
  0xde   :  { %v5375_v9 = vpop.f32.mrb[0].mxu0 }
  0xdf   :  { %301 = vrot.lane.b32.xlu1 %v5375_v9, %s5259_s18  ;;  %130 = vrot.lane.b32.xlu0 %v5375_v9, %s5260_s19  ;;  %v4832_v10 = vpop.f32.mrb[1].mxu0 }
  0xe3   :  { %303 = vrot.lane.b32.xlu0 %v5375_v9, %s5261_s20 }
 0x151   :  { %v131_v11 = vpop.permute.xlu0 %130  ;;  %v302_v13 = vpop.permute.xlu1 %301 }
 0x152   :  { %4834 = vmatpush3.xpose.msk.msra.mxu1 %vm132_vm2, %v131_v11  ;;  %v5466_v11 = vld [vmem:[%s6024_s2 + $0x10] sm:$0x7f] }
 0x153   :  { %4838 = vmatprep.subr.mxu1 %v5258_v4 }
 0x155   :  { %4836 = vmatmul.mubr.msk.f32.vlgmr.msra.gmra.mrb[0].mxu1 %vm132_vm2, %v5375_v9  ;;  %v304_v12 = vpop.permute.xlu0 %303 }
 0x156   :  { %4844 = vmatpush3.xpose.msk.msra.mxu0 %vm132_vm2, %v304_v12  ;;  %4840 = vmatprep.mubr.msk.f32.mxu1 %vm5257_vm0, %v5258_v4 }
 0x157   :  { %4853 = vmatprep.subr.mxu0 %v5258_v4 }
 0x159   :  { %4846 = vmatmul.mubr.msk.f32.vlgmr.msra.gmra.mrb[2].mxu0 %vm132_vm2, %v302_v13 }
 0x15a   :  { %4855 = vmatprep.mubr.msk.f32.mxu0 %vm5257_vm0, %v5258_v4  ;;  %4854 = vmatpush3.msra.mxu0 %v5409_v32 }
 0x15b   :  { %4863 = vmatprep.subr.mxu0 %v5258_v4 }
 0x228   :  { %v203_v14 = vpop.f32.mrb[0].mxu1 }
 0x229   :  { %v207_v15 = vmul.f32 0.35355338, %v203_v14  ;;  %v4837_v16 = vpop.f32.mrb[1].mxu1 }
 0x22a   :  { %v5480_v16 = vld [vmem:[%s6023_s3 + $0x10] sm:$0xff] }
 0x22b   :  { %v209_v17 = vsel %vm208_vm3, %v207_v15, -inf }
 0x22c   :  { %210 = vmax.xlane.f32.xlu1 %v209_v17  ;;  %v375_v18 = vpop.f32.mrb[2].mxu0 }
 0x22d   :  { %v379_v19 = vmul.f32 0.35355338, %v375_v18  ;;  %v4847_v20 = vpop.f32.mrb[3].mxu0 }
 0x22f   :  { %v380_v21 = vsel %vm208_vm3, %v379_v19, -inf }
 0x230   :  { %381 = vmax.xlane.f32.xlu0 %v380_v21 }
 0x2b9   :  { %v211_v22 = vpop.xlane.xlu1 %210 }
 0x2ba   :  { %v212_v23 = vsub.f32 %v207_v15, %v211_v22 }
 0x2bc   :  { %v213_v24 = vmul.f32 1.442695, %v212_v23 }
 0x2bd   :  { %v382_v25 = vpop.xlane.xlu0 %381 }
 0x2be   :  { %5178 = vpow2.f32 %v213_v24  ;;  %v383_v26 = vsub.f32 %v379_v19, %v382_v25 }
 0x2c0   :  { %v384_v27 = vmul.f32 1.442695, %v383_v26 }
 0x2c2   :  { %5180 = vpow2.f32 %v384_v27 }
 0x2c8   :  { %v5179_v28 = vpop.eup %5178 }
 0x2c9   :  { %v215_v29 = vsel %vm208_vm3, %v5179_v28, 0.0 }
 0x2ca   :  { %216 = vadd.xlane.f32.xlu0 %v215_v29 }
 0x2cc   :  { %v5181_v30 = vpop.eup %5180 }
 0x2cd   :  { %v386_v31 = vsel %vm208_vm3, %v5181_v30, 0.0 }
 0x2ce   :  { %387 = vadd.xlane.f32.xlu1 %v386_v31 }
 0x2df   :  { %394 = vrot.lane.b32.xlu1 %v5375_v9, %s5262_s21 }
 0x2e0   :  { %222 = vrot.lane.b32.xlu0 %v5375_v9, %s5263_s22 }
 0x2e3   :  { %619 = vrot.lane.b32.xlu1 %v5375_v9, %s5264_s23 }
 0x2e4   :  { %617 = vrot.lane.b32.xlu0 %v5375_v9, %s5265_s24 }
 0x357   :  { %v217_v33 = vpop.xlane.xlu0 %216 }
 0x358   :  { %5182 = vrcp.f32 %v217_v33 }
 0x35b   :  { %v388_v34 = vpop.xlane.xlu1 %387  ;;  %v223_v35 = vpop.permute.xlu0 %222 }
 0x35c   :  { %5184 = vrcp.f32 %v388_v34  ;;  %4839 = vmatpush3.msk.msra.mxu1 %vm228_vm4, %v223_v35 }
 0x35d   :  { %4848 = vmatprep.subr.mxu1 %v5258_v4 }
 0x35f   :  { %v395_v43 = vpop.permute.xlu1 %394  ;;  %v618_v51 = vpop.permute.xlu0 %617 }
 0x362   :  { %v5183_v36 = vpop.eup %5182 }
 0x363   :  { %v219_v38 = vmul.f32 %v5183_v36, %v5179_v28  ;;  %v620_v49 = vpop.permute.xlu1 %619 }
 0x365   :  { %v221_v39 = vmul.f32 %v5418_v37, %v219_v38  ;;  %v5510_v38 = vld [vmem:[%s6022_s0 + $0x8] sm:$0x7f] }
 0x366   :  { %v5185_v40 = vpop.eup %5184 }
 0x367   :  { %v390_v42 = vmul.f32 %v5185_v40, %v5181_v30  ;;  %4841 = vmatmul.mubr.msk.f32.vlgmr.msra.gmra.mrb[2].mxu1 %vm224_vm5, %v221_v39 }
 0x368   :  { %4849 = vmatpush3.msk.msra.mxu1 %vm228_vm4, %v395_v43  ;;  %4850 = vmatprep.mubr.msk.f32.mxu1 %vm5257_vm0, %v5258_v4 }
 0x369   :  { %v393_v44 = vmul.f32 %v5424_v41, %v390_v42  ;;  %4858 = vmatprep.subr.mxu1 %v5258_v4 }
 0x36b   :  { %4851 = vmatmul.mubr.msk.f32.vlgmr.msra.gmra.mrb[4].mxu1 %vm224_vm5, %v393_v44 }
 0x36c   :  { %4860 = vmatprep.mubr.msk.f32.mxu1 %vm5257_vm0, %v5258_v4  ;;  %4859 = vmatpush3.msra.mxu1 %v5438_v45 }
 0x36d   :  { %4868 = vmatprep.subr.mxu1 %v5258_v4 }
 0x43a   :  { %v297_v46 = vpop.f32.mrb[2].mxu1 }
 0x43b   :  { %v4842_v47 = vpop.f32.mrb[3].mxu1  ;;  %4861 = vmatmul.mubr.msk.f32.vlgmr.msra.gmra.mrb[6].mxu1 %vm132_vm2, %v297_v46 }
 0x43c   :  { %4870 = vmatprep.mubr.msk.f32.mxu1 %vm5257_vm0, %v5258_v4 }
 0x43e   :  { %v467_v48 = vpop.f32.mrb[4].mxu1 }
 0x43f   :  { %v4852_v50 = vpop.f32.mrb[5].mxu1  ;;  %4856 = vmatmul.mubr.msk.f32.vlgmr.msra.gmra.mrb[4].mxu0 %vm132_vm2, %v467_v48 }
 0x440   :  { %4864 = vmatpush3.xpose.msk.msra.mxu0 %vm132_vm2, %v620_v49  ;;  %4865 = vmatprep.mubr.msk.f32.mxu0 %vm5257_vm0, %v5258_v4 }
 0x441   :  { %4873 = vmatprep.subr.mxu0 %v5258_v4 }
 0x443   :  { %4866 = vmatmul.mubr.msk.f32.vlgmr.msra.gmra.mrb[6].mxu0 %vm132_vm2, %v618_v51 }
 0x444   :  { %4875 = vmatprep.mubr.msk.f32.mxu0 %vm5257_vm0, %v5258_v4  ;;  %4874 = vmatpush3.msra.mxu0 %v5480_v16 }
 0x445   :  { %4883 = vmatprep.subr.mxu0 %v5258_v4 }
 0x50e   :  { %v613_v52 = vpop.f32.mrb[6].mxu1 }
 0x50f   :  { %v4862_v53 = vpop.f32.mrb[7].mxu1 }
 0x512   :  { %v540_v54 = vpop.f32.mrb[4].mxu0 }
 0x513   :  { %v614_v55 = vadd.f32 %v613_v52, %v540_v54  ;;  %v4857_v56 = vpop.f32.mrb[5].mxu0 }
 0x516   :  { %v691_v57 = vpop.f32.mrb[6].mxu0 }
 0x517   :  { %v695_v58 = vmul.f32 0.35355338, %v691_v57  ;;  %v4867_v59 = vpop.f32.mrb[7].mxu0 }
 0x519   :  { %v696_v60 = vsel %vm208_vm3, %v695_v58, -inf }
 0x51a   :  { %697 = vmax.xlane.f32.xlu1 %v696_v60 }
 0x52b   :  { %863 = vrot.lane.b32.xlu1 %v5375_v9, %s5266_s16 }
 0x52f   :  { %861 = vrot.lane.b32.xlu1 %v5375_v9, %s5267_s17 }
 0x5a7   :  { %v698_v61 = vpop.xlane.xlu1 %697 }
 0x5a8   :  { %v699_v62 = vsub.f32 %v695_v58, %v698_v61 }
 0x5aa   :  { %v700_v63 = vmul.f32 1.442695, %v699_v62 }
 0x5ab   :  { %v864_v13 = vpop.permute.xlu1 %863 }
 0x5ac   :  { %5186 = vpow2.f32 %v700_v63 }
 0x5af   :  { %v862_v15 = vpop.permute.xlu1 %861 }
 0x5b6   :  { %v5187_v1 = vpop.eup %5186 }
 0x5b7   :  { %v702_v2 = vsel %vm208_vm3, %v5187_v1, 0.0 }
 0x5b8   :  { %703 = vadd.xlane.f32.xlu0 %v702_v2 }
 0x5ce   :  { %710 = vrot.lane.b32.xlu0 %v5375_v9, %s6035_s25 }
 0x645   :  { %v704_v3 = vpop.xlane.xlu0 %703 }
 0x646   :  { %5188 = vrcp.f32 %v704_v3 }
 0x649   :  { %v711_v6 = vpop.permute.xlu0 %710 }
 0x64a   :  { %4869 = vmatpush3.msk.msra.mxu1 %vm228_vm4, %v711_v6 }
 0x64b   :  { %4878 = vmatprep.subr.mxu1 %v5258_v4 }
 0x650   :  { %v5189_v10 = vpop.eup %5188 }
 0x651   :  { %v706_v12 = vmul.f32 %v5189_v10, %v5187_v1 }
 0x653   :  { %v709_v14 = vmul.f32 %v5466_v11, %v706_v12 }
 0x655   :  { %4871 = vmatmul.mubr.msk.f32.vlgmr.msra.gmra.mrb[8].mxu1 %vm224_vm5, %v709_v14 }
 0x656   :  { %4879 = vmatpush3.xpose.msk.msra.mxu1 %vm132_vm2, %v864_v13  ;;  %4880 = vmatprep.mubr.msk.f32.mxu1 %vm5257_vm0, %v5258_v4 }
 0x657   :  { %4888 = vmatprep.subr.mxu1 %v5258_v4 }
 0x659   :  { %4881 = vmatmul.mubr.msk.f32.vlgmr.msra.gmra.mrb[10].mxu1 %vm132_vm2, %v862_v15 }
 0x65a   :  { %4890 = vmatprep.mubr.msk.f32.mxu1 %vm5257_vm0, %v5258_v4 }
 0x728   :  { %v783_v17 = vpop.f32.mrb[8].mxu1 }
 0x729   :  { %v4872_v18 = vpop.f32.mrb[9].mxu1  ;;  %4876 = vmatmul.mubr.msk.f32.vlgmr.msra.gmra.mrb[8].mxu0 %vm132_vm2, %v783_v17 }
 0x72a   :  { %4885 = vmatprep.mubr.msk.f32.mxu0 %vm5257_vm0, %v5258_v4 }
 0x72c   :  { %v935_v19 = vpop.f32.mrb[10].mxu1 }
 0x72d   :  { %v939_v20 = vmul.f32 0.35355338, %v935_v19  ;;  %v4882_v21 = vpop.f32.mrb[11].mxu1 }
 0x72f   :  { %v940_v22 = vsel %vm208_vm3, %v939_v20, -inf }
 0x730   :  { %941 = vmax.xlane.f32.xlu0 %v940_v22 }
 0x746   :  { %955 = vrot.lane.b32.xlu0 %v5375_v9, %s6037_s30  ;;  %v5496_v9 = vld [vmem:[%s6024_s2 + $0x18] sm:$0x7f] }
 0x7bd   :  { %v942_v23 = vpop.xlane.xlu0 %941 }
 0x7be   :  { %v943_v24 = vsub.f32 %v939_v20, %v942_v23 }
 0x7c0   :  { %v944_v25 = vmul.f32 1.442695, %v943_v24 }
 0x7c1   :  { %v956_v26 = vpop.permute.xlu0 %955 }
 0x7c2   :  { %5190 = vpow2.f32 %v944_v25  ;;  %4884 = vmatpush3.msk.msra.mxu0 %vm228_vm4, %v956_v26 }
 0x7c3   :  { %5134 = vmatprep.subr.bf16.mxu0 %v5256_v0 }
 0x7cc   :  { %v5191_v27 = vpop.eup %5190 }
 0x7cd   :  { %v946_v28 = vsel %vm208_vm3, %v5191_v27, 0.0 }
 0x7ce   :  { %947 = vadd.xlane.f32.xlu1 %v946_v28 }
 0x7fc   :  { %v856_v29 = vpop.f32.mrb[8].mxu0 }
 0x7fd   :  { %v860_v30 = vadd.f32 %v856_v29, %v614_v55  ;;  %v4877_v31 = vpop.f32.mrb[9].mxu0 }
 0x85b   :  { %v948_v33 = vpop.xlane.xlu1 %947 }
 0x85c   :  { %5192 = vrcp.f32 %v948_v33 }
 0x866   :  { %v5193_v34 = vpop.eup %5192 }
 0x867   :  { %v950_v35 = vmul.f32 %v5193_v34, %v5191_v27 }
 0x869   :  { %v5499_v36 = vmul.f32 %v5496_v9, %v950_v35 }
 0x86b   :  { %4886 = vmatmul.mubr.msk.f32.vlgmr.msra.gmra.mrb[10].mxu0 %vm224_vm5, %v5499_v36 }
 0x86c   :  { %5136 = vmatpush3.bf16.msra.mxu0 %v5352_v5  ;;  %4901 = vmatprep.mubr.msk.f32.mxu0 %vm5257_vm0, %v5258_v4  ;;  %v5521_v5 = vld [vmem:[%s6023_s3 + $0x18] sm:$0xff] }
 0x86d   :  { %5137 = vmatprep.subr.bf16.mxu0 %v5256_v0  ;;  %4889 = vmatpush3.msra.mxu1 %v5521_v5 }
 0x86e   :  { %4904 = vmatprep.subr.mxu1 %v5258_v4 }
 0x870   :  { %5139 = vmatpush3.bf16.msra.mxu0 %v5361_v7 }
 0x871   :  { %4914 = vmatprep.subr.mxu0 %v5258_v4 }
 0x873   :  { %4902 = vmatmul.mubr.msk.f32.vlgmr.msra.gmra.mrb[12].mxu0 %vm55_vm1, %v5510_v38 }
 0x874   :  { %4916 = vmatprep.mubr.msk.f32.mxu0 %vm5257_vm0, %v5258_v4 }
 0x93e   :  { %v1028_v39 = vpop.f32.mrb[10].mxu0 }
 0x93f   :  { %v4887_v40 = vpop.f32.mrb[11].mxu0  ;;  %4891 = vmatmul.mubr.msk.f32.vlgmr.msra.gmra.mrb[12].mxu1 %vm132_vm2, %v1028_v39 }
 0x940   :  { %4906 = vmatprep.mubr.msk.f32.mxu1 %vm5257_vm0, %v5258_v4 }
 0x946   :  { %v5528_v7 = vpop.f32.mrb[12].mxu0 }
 0x947   :  { %1385 = vrot.lane.b32.xlu0 %v5528_v7, %s5261_s20  ;;  %1217 = vrot.lane.b32.xlu1 %v5528_v7, %s5260_s19  ;;  %v4903_v42 = vpop.f32.mrb[13].mxu0 }
 0x94b   :  { %1383 = vrot.lane.b32.xlu1 %v5528_v7, %s5259_s18 }
 0x9b9   :  { %v1386_v43 = vpop.permute.xlu0 %1385  ;;  %v1218_v44 = vpop.permute.xlu1 %1217 }
 0x9ba   :  { %4905 = vmatpush3.xpose.msk.msra.mxu1 %vm132_vm2, %v1218_v44  ;;  %4915 = vmatpush3.xpose.msk.msra.mxu0 %vm132_vm2, %v1386_v43 }
 0x9bb   :  { %4909 = vmatprep.subr.mxu1 %v5258_v4  ;;  %4924 = vmatprep.subr.mxu0 %v5258_v4 }
 0x9bd   :  { %4907 = vmatmul.mubr.msk.f32.vlgmr.msra.gmra.mrb[14].mxu1 %vm132_vm2, %v5528_v7  ;;  %v1384_v46 = vpop.permute.xlu1 %1383 }
 0x9be   :  { %4917 = vmatmul.mubr.msk.f32.vlgmr.msra.gmra.mrb[14].mxu0 %vm132_vm2, %v1384_v46  ;;  %4911 = vmatprep.mubr.msk.f32.mxu1 %vm5257_vm0, %v5258_v4 }
 0x9bf   :  { %4925 = vmatpush3.msra.mxu0 %v5409_v32  ;;  %4926 = vmatprep.mubr.msk.f32.mxu0 %vm5257_vm0, %v5258_v4 }
 0x9c0   :  { %4934 = vmatprep.subr.mxu0 %v5258_v4 }
 0xa12   :  { %v1101_v47 = vpop.f32.mrb[12].mxu1 }
 0xa13   :  { %v5549_v48 = vadd.f32 %v1101_v47, %v860_v30  ;;  %v4892_v49 = vpop.f32.mrb[13].mxu1 }
 0xa90   :  { %v1289_v50 = vpop.f32.mrb[14].mxu1 }
 0xa91   :  { %v1293_v51 = vmul.f32 0.35355338, %v1289_v50  ;;  %v4908_v52 = vpop.f32.mrb[15].mxu1  ;;  %v1457_v53 = vpop.f32.mrb[14].mxu0 }
 0xa92   :  { %v1461_v54 = vmul.f32 0.35355338, %v1457_v53  ;;  %v4918_v55 = vpop.f32.mrb[15].mxu0 }
 0xa93   :  { %v1294_v56 = vsel %vm208_vm3, %v1293_v51, -inf }
 0xa94   :  { %1295 = vmax.xlane.f32.xlu0 %v1294_v56  ;;  %v1462_v32 = vsel %vm208_vm3, %v1461_v54, -inf }
 0xa95   :  { %1463 = vmax.xlane.f32.xlu1 %v1462_v32 }
 0xaa6   :  { %1306 = vrot.lane.b32.xlu1 %v5528_v7, %s5263_s22 }
 0xaaa   :  { %1699 = vrot.lane.b32.xlu1 %v5528_v7, %s5264_s23 }
 0xaae   :  { %1697 = vrot.lane.b32.xlu1 %v5528_v7, %s5265_s24 }
 0xb21   :  { %v1296_v57 = vpop.xlane.xlu0 %1295 }
 0xb22   :  { %v1297_v58 = vsub.f32 %v1293_v51, %v1296_v57  ;;  %v1464_v59 = vpop.xlane.xlu1 %1463 }
 0xb23   :  { %v1465_v60 = vsub.f32 %v1461_v54, %v1464_v59 }
 0xb24   :  { %v1298_v61 = vmul.f32 1.442695, %v1297_v58 }
 0xb25   :  { %v1466_v62 = vmul.f32 1.442695, %v1465_v60 }
 0xb26   :  { %5194 = vpow2.f32 %v1298_v61  ;;  %v1307_v63 = vpop.permute.xlu1 %1306 }
 0xb27   :  { %4910 = vmatpush3.msk.msra.mxu1 %vm228_vm4, %v1307_v63  ;;  %5196 = vpow2.f32 %v1466_v62 }
 0xb28   :  { %4919 = vmatprep.subr.mxu1 %v5258_v4 }
 0xb2a   :  { %v1700_v22 = vpop.permute.xlu1 %1699 }
 0xb30   :  { %v5195_v1 = vpop.eup %5194 }
 0xb31   :  { %v1300_v2 = vsel %vm208_vm3, %v5195_v1, 0.0  ;;  %v5197_v3 = vpop.eup %5196 }
 0xb32   :  { %1301 = vadd.xlane.f32.xlu0 %v1300_v2  ;;  %v1468_v6 = vsel %vm208_vm3, %v5197_v3, 0.0 }
 0xb36   :  { %1469 = vadd.xlane.f32.xlu0 %v1468_v6 }
 0xb4c   :  { %1474 = vrot.lane.b32.xlu0 %v5528_v7, %s5262_s21 }
 0xbbf   :  { %v1302_v10 = vpop.xlane.xlu0 %1301 }
 0xbc0   :  { %5198 = vrcp.f32 %v1302_v10 }
 0xbc3   :  { %v1470_v12 = vpop.xlane.xlu0 %1469 }
 0xbc4   :  { %5200 = vrcp.f32 %v1470_v12 }
 0xbc7   :  { %v1475_v19 = vpop.permute.xlu0 %1474 }
 0xbca   :  { %v5199_v13 = vpop.eup %5198 }
 0xbcb   :  { %v1304_v14 = vmul.f32 %v5199_v13, %v5195_v1 }
 0xbcd   :  { %v1305_v15 = vmul.f32 %v1304_v14, %v5418_v37 }
 0xbce   :  { %v5201_v17 = vpop.eup %5200 }
 0xbcf   :  { %v1472_v18 = vmul.f32 %v5201_v17, %v5197_v3  ;;  %4912 = vmatmul.mubr.msk.f32.vlgmr.msra.gmra.mrb[16].mxu1 %vm224_vm5, %v1305_v15 }
 0xbd0   :  { %4920 = vmatpush3.msk.msra.mxu1 %vm228_vm4, %v1475_v19  ;;  %4921 = vmatprep.mubr.msk.f32.mxu1 %vm5257_vm0, %v5258_v4  ;;  %v4629_v19 = vld [vmem:[%s6021_s1 + $0x28] sm:$0xff] }
 0xbd1   :  { %v1473_v20 = vmul.f32 %v5424_v41, %v1472_v18  ;;  %4929 = vmatprep.subr.mxu1 %v5258_v4 }
 0xbd3   :  { %4922 = vmatmul.mubr.msk.f32.vlgmr.msra.gmra.mrb[18].mxu1 %vm224_vm5, %v1473_v20 }
 0xbd4   :  { %4930 = vmatpush3.msra.mxu1 %v5438_v45  ;;  %4931 = vmatprep.mubr.msk.f32.mxu1 %vm5257_vm0, %v5258_v4  ;;  %v1698_v45 = vpop.permute.xlu1 %1697 }
 0xbd5   :  { %4939 = vmatprep.subr.mxu1 %v5258_v4 }
 0xca2   :  { %v1379_v37 = vpop.f32.mrb[16].mxu1 }
 0xca3   :  { %v4913_v21 = vpop.f32.mrb[17].mxu1  ;;  %4932 = vmatmul.mubr.msk.f32.vlgmr.msra.gmra.mrb[20].mxu1 %vm132_vm2, %v1379_v37 }
 0xca4   :  { %4941 = vmatprep.mubr.msk.f32.mxu1 %vm5257_vm0, %v5258_v4 }
 0xca6   :  { %v1547_v41 = vpop.f32.mrb[18].mxu1 }
 0xca7   :  { %v4923_v23 = vpop.f32.mrb[19].mxu1  ;;  %4927 = vmatmul.mubr.msk.f32.vlgmr.msra.gmra.mrb[16].mxu0 %vm132_vm2, %v1547_v41 }
 0xca8   :  { %4935 = vmatpush3.xpose.msk.msra.mxu0 %vm132_vm2, %v1700_v22  ;;  %4936 = vmatprep.mubr.msk.f32.mxu0 %vm5257_vm0, %v5258_v4  ;;  %v4630_v23 = vld [vmem:[%s6021_s1 + $0x30] sm:$0xff] }
 0xca9   :  { %4944 = vmatprep.subr.mxu0 %v5258_v4 }
 0xcab   :  { %4937 = vmatmul.mubr.msk.f32.vlgmr.msra.gmra.mrb[18].mxu0 %vm132_vm2, %v1698_v45  ;;  %v4631_v45 = vld [vmem:[%s6021_s1 + $0x38] sm:$0xff] }
 0xcac   :  { %4945 = vmatpush3.msra.mxu0 %v5480_v16  ;;  %4946 = vmatprep.mubr.msk.f32.mxu0 %vm5257_vm0, %v5258_v4  ;;  %v5600_v16 = vld [vmem:[%s6025_s4] ss:$0 sm:$0xff] }
 0xcad   :  { %4954 = vmatprep.subr.mxu0 %v5258_v4  ;;  %v1112_v34 = vadd.f32 %v5600_v16, %v5549_v48 }
 0xcaf   :  { %v1113_v35 = vadd.f32 %v1112_v34, %v5368_v8 }
 0xcb1   :  { %v1115_v39 = vsel %vm1114_vm6, %v1113_v35, 0.0 }
 0xd76   :  { %v1693_v24 = vpop.f32.mrb[20].mxu1 }
 0xd77   :  { %v4933_v25 = vpop.f32.mrb[21].mxu1 }
 0xd7a   :  { %v1620_v26 = vpop.f32.mrb[16].mxu0 }
 0xd7b   :  { %v5590_v27 = vadd.f32 %v1693_v24, %v1620_v26  ;;  %v4928_v28 = vpop.f32.mrb[17].mxu0  ;;  %v5651_v24 = vld [vmem:[%s6026_s5] ss:$0 sm:$0xff] }
 0xd7c   :  { %v5665_v28 = vld [vmem:[%s6027_s6] ss:$0 sm:$0xff] }
 0xd7e   :  { %v1771_v29 = vpop.f32.mrb[18].mxu0 }
 0xd7f   :  { %v1775_v30 = vmul.f32 0.35355338, %v1771_v29  ;;  %v4938_v31 = vpop.f32.mrb[19].mxu0 }
 0xd81   :  { %v1776_v33 = vsel %vm208_vm3, %v1775_v30, -inf }
 0xd82   :  { %1777 = vmax.xlane.f32.xlu0 %v1776_v33 }
 0xd98   :  { %1788 = vrot.lane.b32.xlu0 %v5528_v7, %s6035_s25 }
 0xd9c   :  { %1939 = vrot.lane.b32.xlu0 %v5528_v7, %s5267_s17 }
 0xdbb   :  { %1116 = vadd.xlane.f32.xlu0 %v1115_v39 }
 0xe0f   :  { %v1778_v40 = vpop.xlane.xlu0 %1777 }
 0xe10   :  { %v1779_v42 = vsub.f32 %v1775_v30, %v1778_v40 }
 0xe12   :  { %v1780_v43 = vmul.f32 1.442695, %v1779_v42 }
 0xe13   :  { %v1789_v44 = vpop.permute.xlu0 %1788 }
 0xe14   :  { %5202 = vpow2.f32 %v1780_v43  ;;  %4940 = vmatpush3.msk.msra.mxu1 %vm228_vm4, %v1789_v44 }
 0xe15   :  { %4949 = vmatprep.subr.mxu1 %v5258_v4 }
 0xe17   :  { %v1940_v52 = vpop.permute.xlu0 %1939 }
 0xe1e   :  { %v5203_v46 = vpop.eup %5202 }
 0xe1f   :  { %v1782_v47 = vsel %vm208_vm3, %v5203_v46, 0.0 }
 0xe20   :  { %1783 = vadd.xlane.f32.xlu1 %v1782_v47 }
 0xe31   :  { %1941 = vrot.lane.b32.xlu1 %v5528_v7, %s5266_s16 }
 0xead   :  { %v1784_v8 = vpop.xlane.xlu1 %1783 }
 0xeae   :  { %5204 = vrcp.f32 %v1784_v8 }
 0xeb1   :  { %v1942_v51 = vpop.permute.xlu1 %1941 }
 0xeb8   :  { %v5205_v48 = vpop.eup %5204 }
 0xeb9   :  { %v1786_v49 = vmul.f32 %v5205_v48, %v5203_v46 }
 0xebb   :  { %v1787_v50 = vmul.f32 %v5466_v11, %v1786_v49  ;;  %v1117_v11 = vpop.xlane.xlu0 %1116 }
 0xebc   :  { %v1119_v53 = vmul.f32 0.03125, %v1117_v11 }
 0xebd   :  { %4942 = vmatmul.mubr.msk.f32.vlgmr.msra.gmra.mrb[22].mxu1 %vm224_vm5, %v1787_v50 }
 0xebe   :  { %4950 = vmatpush3.xpose.msk.msra.mxu1 %vm132_vm2, %v1942_v51  ;;  %4951 = vmatprep.mubr.msk.f32.mxu1 %vm5257_vm0, %v5258_v4  ;;  %v1120_v56 = vsub.f32 %v1113_v35, %v1119_v53 }
 0xebf   :  { %4959 = vmatprep.subr.mxu1 %v5258_v4 }
 0xec0   :  { %v1121_v59 = vmul.f32 %v1120_v56, %v1120_v56 }
 0xec1   :  { %4952 = vmatmul.mubr.msk.f32.vlgmr.msra.gmra.mrb[24].mxu1 %vm132_vm2, %v1940_v52 }
 0xec2   :  { %4960 = vmatpush3.msra.mxu1 %v5521_v5  ;;  %4961 = vmatprep.mubr.msk.f32.mxu1 %vm5257_vm0, %v5258_v4  ;;  %v1122_v60 = vsel %vm1114_vm6, %v1121_v59, 0.0  ;;  %v5719_v59 = vld [vmem:[%s6023_s3 + $0x28] sm:$0xff] }
 0xec3   :  { %4975 = vmatprep.subr.mxu1 %v5258_v4 }
 0xf90   :  { %v1861_v54 = vpop.f32.mrb[22].mxu1 }
 0xf91   :  { %v4943_v55 = vpop.f32.mrb[23].mxu1  ;;  %4947 = vmatmul.mubr.msk.f32.vlgmr.msra.gmra.mrb[20].mxu0 %vm132_vm2, %v1861_v54 }
 0xf92   :  { %4956 = vmatprep.mubr.msk.f32.mxu0 %vm5257_vm0, %v5258_v4 }
 0xf94   :  { %v2013_v32 = vpop.f32.mrb[24].mxu1 }
 0xf95   :  { %v2017_v57 = vmul.f32 0.35355338, %v2013_v32  ;;  %v4953_v58 = vpop.f32.mrb[25].mxu1 }
 0xf97   :  { %v2018_v5 = vsel %vm208_vm3, %v2017_v57, -inf }
 0xf98   :  { %2019 = vmax.xlane.f32.xlu1 %v2018_v5 }
 0xf9c   :  { %1123 = vadd.xlane.f32.xlu1 %v1122_v60 }
0x1025   :  { %v2020_v61 = vpop.xlane.xlu1 %2019 }
0x1026   :  { %v2021_v62 = vsub.f32 %v2017_v57, %v2020_v61 }
0x1028   :  { %v2022_v63 = vmul.f32 1.442695, %v2021_v62 }
0x1029   :  { %v1124_v12 = vpop.xlane.xlu1 %1123 }
0x102a   :  { %5206 = vpow2.f32 %v2022_v63  ;;  %v1125_v13 = vmul.f32 0.03125, %v1124_v12 }
0x102c   :  { %v1126_v14 = vadd.f32 1e-05, %v1125_v13 }
0x102e   :  { %5208 = vrsqrt.f32 %v1126_v14 }
0x1034   :  { %v5207_v1 = vpop.eup %5206 }
0x1035   :  { %v2024_v2 = vsel %vm208_vm3, %v5207_v1, 0.0 }
0x1036   :  { %2025 = vadd.xlane.f32.xlu0 %v2024_v2 }
0x1038   :  { %v5209_v18 = vpop.eup %5208 }
0x1039   :  { %v1128_v22 = vmul.f32 %v5209_v18, %v1120_v56 }
0x104c   :  { %2031 = vrot.lane.b32.xlu0 %v5528_v7, %s6037_s30  ;;  %v4628_v7 = vld [vmem:[%s6021_s1 + $0x20] sm:$0xff] }
0x104d   :  { %v5639_v21 = vpack.c.bf16 %v4629_v19, %v4628_v7 }
0x1064   :  { %v1934_v3 = vpop.f32.mrb[20].mxu0 }
0x1065   :  { %v1938_v6 = vadd.f32 %v1934_v3, %v5590_v27  ;;  %v4948_v10 = vpop.f32.mrb[21].mxu0  ;;  %v1135_v27 = vmul.f32 %v5651_v24, %v1128_v22 }
0x1066   :  { %v5734_v10 = vld [vmem:[%s6024_s2 + $0x28] sm:$0x7f] }
0x10c3   :  { %v2026_v15 = vpop.xlane.xlu0 %2025 }
0x10c4   :  { %5210 = vrcp.f32 %v2026_v15  ;;  %v5748_v15 = vld [vmem:[%s6023_s3 + $0x20] sm:$0xff] }
0x10c7   :  { %v2032_v17 = vpop.permute.xlu0 %2031 }
0x10c8   :  { %4955 = vmatpush3.msk.msra.mxu0 %vm228_vm4, %v2032_v17 }
0x10c9   :  { %5140 = vmatprep.subr.bf16.mxu0 %v5256_v0 }
0x10ce   :  { %v5211_v20 = vpop.eup %5210 }
0x10cf   :  { %v2028_v37 = vmul.f32 %v5211_v20, %v5207_v1  ;;  %v5728_v1 = vld [vmem:[%s6024_s2 + $0x20] sm:$0x7f] }
0x10d1   :  { %v2029_v41 = vmul.f32 %v5496_v9, %v2028_v37  ;;  %v5656_v9 = vpack.c.bf16 %v4631_v45, %v4630_v23 }
0x10d3   :  { %v2030_v25 = vadd.f32 %v2029_v41, %v5499_v36  ;;  %4957 = vmatmul.mubr.msk.f32.vlgmr.msra.gmra.mrb[22].mxu0 %vm224_vm5, %v2029_v41  ;;  %v5673_v36 = vadd.f32 %v5665_v28, %v1135_v27 }
0x10d4   :  { %5142 = vmatpush3.bf16.msra.mxu0 %v5639_v21  ;;  %4972 = vmatprep.mubr.msk.f32.mxu0 %vm5257_vm0, %v5258_v4 }
0x10d5   :  { %v2199_v26 = vmul.f32 0.5, %v2030_v25  ;;  %5143 = vmatprep.subr.bf16.mxu0 %v5256_v0 }
0x10d7   :  { %2200 = vst.msk [vmem:[%s6028_s12] sm:$0x7f] %vm208_vm3, %v2199_v26 }
0x10d8   :  { %5145 = vmatpush3.bf16.msra.mxu0 %v5656_v9 }
0x10d9   :  { %4985 = vmatprep.subr.mxu0 %v5258_v4 }
0x10db   :  { %4973 = vmatmul.mubr.msk.f32.vlgmr.msra.gmra.mrb[24].mxu0 %vm55_vm1, %v5673_v36 }
0x10dc   :  { %4987 = vmatprep.mubr.msk.f32.mxu0 %vm5257_vm0, %v5258_v4 }
0x11a6   :  { %v2104_v29 = vpop.f32.mrb[22].mxu0 }
0x11a7   :  { %v4958_v30 = vpop.f32.mrb[23].mxu0  ;;  %4962 = vmatmul.mubr.msk.f32.vlgmr.msra.gmra.mrb[26].mxu1 %vm132_vm2, %v2104_v29 }
0x11a8   :  { %4977 = vmatprep.mubr.msk.f32.mxu1 %vm5257_vm0, %v5258_v4 }
0x11ae   :  { %v5683_v31 = vpop.f32.mrb[24].mxu0 }
0x11af   :  { %2459 = vrot.lane.b32.xlu0 %v5683_v31, %s5259_s18  ;;  %2291 = vrot.lane.b32.xlu1 %v5683_v31, %s5260_s19  ;;  %v4974_v33 = vpop.f32.mrb[25].mxu0 }
0x11b3   :  { %2461 = vrot.lane.b32.xlu1 %v5683_v31, %s5261_s20 }
0x1221   :  { %v2292_v34 = vpop.permute.xlu1 %2291  ;;  %v2460_v39 = vpop.permute.xlu0 %2459 }
0x1222   :  { %4976 = vmatpush3.xpose.msk.msra.mxu1 %vm132_vm2, %v2292_v34 }
0x1223   :  { %4980 = vmatprep.subr.mxu1 %v5258_v4 }
0x1225   :  { %4978 = vmatmul.mubr.msk.f32.vlgmr.msra.gmra.mrb[28].mxu1 %vm132_vm2, %v5683_v31  ;;  %v2462_v35 = vpop.permute.xlu1 %2461 }
0x1226   :  { %4986 = vmatpush3.xpose.msk.msra.mxu0 %vm132_vm2, %v2462_v35  ;;  %4982 = vmatprep.mubr.msk.f32.mxu1 %vm5257_vm0, %v5258_v4 }
0x1227   :  { %4995 = vmatprep.subr.mxu0 %v5258_v4 }
0x1229   :  { %4988 = vmatmul.mubr.msk.f32.vlgmr.msra.gmra.mrb[26].mxu0 %vm132_vm2, %v2460_v39 }
0x122a   :  { %4997 = vmatprep.mubr.msk.f32.mxu0 %vm5257_vm0, %v5258_v4  ;;  %4996 = vmatpush3.msra.mxu0 %v5719_v59 }
0x122b   :  { %5005 = vmatprep.subr.mxu0 %v5258_v4 }
0x127a   :  { %v2177_v40 = vpop.f32.mrb[26].mxu1 }
0x127b   :  { %v5702_v42 = vadd.f32 %v2177_v40, %v1938_v6  ;;  %v4963_v43 = vpop.f32.mrb[27].mxu1 }
0x127d   :  { %v2182_v33 = vadd.f32 %v5600_v16, %v5702_v42 }
0x127f   :  { %v2183_v34 = vadd.f32 %v5510_v38, %v2182_v33  ;;  %v5782_v38 = vld [vmem:[%s6023_s3 + $0x30] sm:$0xff]  ;;  %v5869_v33 = vld [vmem:[%s6025_s4 + $0x1] ss:$0 sm:$0xff] }
0x1281   :  { %v2184_v35 = vsel %vm1114_vm6, %v2183_v34, 0.0 }
0x12f8   :  { %v2363_v44 = vpop.f32.mrb[28].mxu1 }
0x12f9   :  { %v2367_v46 = vmul.f32 0.35355338, %v2363_v44  ;;  %v4979_v47 = vpop.f32.mrb[29].mxu1 }
0x12fb   :  { %v2368_v8 = vsel %vm208_vm3, %v2367_v46, -inf }
0x12fc   :  { %2369 = vmax.xlane.f32.xlu1 %v2368_v8  ;;  %v2533_v48 = vpop.f32.mrb[26].mxu0 }
0x12fd   :  { %v2537_v49 = vmul.f32 0.35355338, %v2533_v48  ;;  %v4989_v50 = vpop.f32.mrb[27].mxu0 }
0x12ff   :  { %v2538_v51 = vsel %vm208_vm3, %v2537_v49, -inf }
0x1300   :  { %2539 = vmax.xlane.f32.xlu0 %v2538_v51 }
0x1389   :  { %v2370_v52 = vpop.xlane.xlu1 %2369 }
0x138a   :  { %v2371_v11 = vsub.f32 %v2367_v46, %v2370_v52 }
0x138c   :  { %v2372_v53 = vmul.f32 1.442695, %v2371_v11 }
0x138d   :  { %v2540_v54 = vpop.xlane.xlu0 %2539 }
0x138e   :  { %5212 = vpow2.f32 %v2372_v53  ;;  %v2541_v55 = vsub.f32 %v2537_v49, %v2540_v54 }
0x1390   :  { %v2542_v56 = vmul.f32 1.442695, %v2541_v55 }
0x1392   :  { %5214 = vpow2.f32 %v2542_v56 }
0x1398   :  { %v5213_v32 = vpop.eup %5212 }
0x1399   :  { %v2374_v57 = vsel %vm208_vm3, %v5213_v32, 0.0 }
0x139a   :  { %2375 = vadd.xlane.f32.xlu0 %v2374_v57 }
0x139c   :  { %v5215_v58 = vpop.eup %5214 }
0x139d   :  { %v2544_v5 = vsel %vm208_vm3, %v5215_v58, 0.0 }
0x139e   :  { %2545 = vadd.xlane.f32.xlu1 %v2544_v5 }
0x13af   :  { %2552 = vrot.lane.b32.xlu1 %v5683_v31, %s5262_s21 }
0x13b0   :  { %2382 = vrot.lane.b32.xlu0 %v5683_v31, %s5263_s22 }
0x13b3   :  { %2777 = vrot.lane.b32.xlu1 %v5683_v31, %s5264_s23 }
0x13b4   :  { %2775 = vrot.lane.b32.xlu0 %v5683_v31, %s5265_s24 }
0x1427   :  { %v2376_v60 = vpop.xlane.xlu0 %2375 }
0x1428   :  { %5216 = vrcp.f32 %v2376_v60 }
0x142b   :  { %v2546_v61 = vpop.xlane.xlu1 %2545  ;;  %v2383_v62 = vpop.permute.xlu0 %2382 }
0x142c   :  { %5218 = vrcp.f32 %v2546_v61  ;;  %4981 = vmatpush3.msk.msra.mxu1 %vm228_vm4, %v2383_v62 }
0x142d   :  { %4990 = vmatprep.subr.mxu1 %v5258_v4 }
0x142f   :  { %v2553_v13 = vpop.permute.xlu1 %2552  ;;  %v2776_v37 = vpop.permute.xlu0 %2775 }
0x1432   :  { %v5217_v63 = vpop.eup %5216 }
0x1433   :  { %v2378_v2 = vmul.f32 %v5217_v63, %v5213_v32  ;;  %v2778_v19 = vpop.permute.xlu1 %2777 }
0x1435   :  { %v2381_v3 = vmul.f32 %v5728_v1, %v2378_v2 }
0x1436   :  { %v5219_v6 = vpop.eup %5218 }
0x1437   :  { %v2548_v12 = vmul.f32 %v5219_v6, %v5215_v58  ;;  %4983 = vmatmul.mubr.msk.f32.vlgmr.msra.gmra.mrb[30].mxu1 %vm224_vm5, %v2381_v3 }
0x1438   :  { %4991 = vmatpush3.msk.msra.mxu1 %vm228_vm4, %v2553_v13  ;;  %4992 = vmatprep.mubr.msk.f32.mxu1 %vm5257_vm0, %v5258_v4 }
0x1439   :  { %v2551_v14 = vmul.f32 %v5734_v10, %v2548_v12  ;;  %5000 = vmatprep.subr.mxu1 %v5258_v4 }
0x143b   :  { %4993 = vmatmul.mubr.msk.f32.vlgmr.msra.gmra.mrb[32].mxu1 %vm224_vm5, %v2551_v14 }
0x143c   :  { %5002 = vmatprep.mubr.msk.f32.mxu1 %vm5257_vm0, %v5258_v4  ;;  %5001 = vmatpush3.msra.mxu1 %v5748_v15 }
0x143d   :  { %5010 = vmatprep.subr.mxu1 %v5258_v4 }
0x150a   :  { %v2455_v17 = vpop.f32.mrb[30].mxu1 }
0x150b   :  { %v4984_v18 = vpop.f32.mrb[31].mxu1  ;;  %5003 = vmatmul.mubr.msk.f32.vlgmr.msra.gmra.mrb[34].mxu1 %vm132_vm2, %v2455_v17 }
0x150c   :  { %5012 = vmatprep.mubr.msk.f32.mxu1 %vm5257_vm0, %v5258_v4 }
0x150e   :  { %v2625_v7 = vpop.f32.mrb[32].mxu1 }
0x150f   :  { %v4994_v20 = vpop.f32.mrb[33].mxu1  ;;  %4998 = vmatmul.mubr.msk.f32.vlgmr.msra.gmra.mrb[28].mxu0 %vm132_vm2, %v2625_v7 }
0x1510   :  { %5006 = vmatpush3.xpose.msk.msra.mxu0 %vm132_vm2, %v2778_v19  ;;  %5007 = vmatprep.mubr.msk.f32.mxu0 %vm5257_vm0, %v5258_v4  ;;  %v5814_v20 = vld [vmem:[%s6024_s2 + $0x38] sm:$0x7f] }
0x1511   :  { %5015 = vmatprep.subr.mxu0 %v5258_v4 }
0x1513   :  { %5008 = vmatmul.mubr.msk.f32.vlgmr.msra.gmra.mrb[30].mxu0 %vm132_vm2, %v2776_v37 }
0x1514   :  { %5017 = vmatprep.mubr.msk.f32.mxu0 %vm5257_vm0, %v5258_v4  ;;  %5016 = vmatpush3.msra.mxu0 %v5782_v38 }
0x1515   :  { %5025 = vmatprep.subr.mxu0 %v5258_v4 }
0x15de   :  { %v2771_v22 = vpop.f32.mrb[34].mxu1 }
0x15df   :  { %v5004_v41 = vpop.f32.mrb[35].mxu1 }
0x15e2   :  { %v2698_v23 = vpop.f32.mrb[28].mxu0 }
0x15e3   :  { %v5763_v45 = vadd.f32 %v2771_v22, %v2698_v23  ;;  %v4999_v25 = vpop.f32.mrb[29].mxu0 }
0x15e6   :  { %v2849_v26 = vpop.f32.mrb[30].mxu0 }
0x15e7   :  { %v2853_v27 = vmul.f32 0.35355338, %v2849_v26  ;;  %v5009_v29 = vpop.f32.mrb[31].mxu0 }
0x15e9   :  { %v2854_v30 = vsel %vm208_vm3, %v2853_v27, -inf }
0x15ea   :  { %2855 = vmax.xlane.f32.xlu1 %v2854_v30 }
0x15fb   :  { %3021 = vrot.lane.b32.xlu1 %v5683_v31, %s5266_s16 }
0x15ff   :  { %3019 = vrot.lane.b32.xlu1 %v5683_v31, %s5267_s17 }
0x1623   :  { %2185 = vadd.xlane.f32.xlu1 %v2184_v35 }
0x1634   :  { %3113 = vrot.lane.b32.xlu1 %v5683_v31, %s6039_s28 }
0x1677   :  { %v2856_v39 = vpop.xlane.xlu1 %2855 }
0x1678   :  { %v2857_v40 = vsub.f32 %v2853_v27, %v2856_v39 }
0x167a   :  { %v2858_v43 = vmul.f32 1.442695, %v2857_v40 }
0x167b   :  { %v3022_v48 = vpop.permute.xlu1 %3021 }
0x167c   :  { %5220 = vpow2.f32 %v2858_v43 }
0x167f   :  { %v3020_v50 = vpop.permute.xlu1 %3019 }
0x1686   :  { %v5221_v44 = vpop.eup %5220 }
0x1687   :  { %v2860_v46 = vsel %vm208_vm3, %v5221_v44, 0.0 }
0x1688   :  { %2861 = vadd.xlane.f32.xlu0 %v2860_v46 }
0x169e   :  { %2868 = vrot.lane.b32.xlu0 %v5683_v31, %s6040_s29  ;;  %v5791_v31 = vld [vmem:[%s6024_s2 + $0x30] sm:$0x7f] }
0x16b0   :  { %v2186_v51 = vpop.xlane.xlu1 %2185 }
0x16b1   :  { %v2187_v60 = vmul.f32 0.03125, %v2186_v51 }
0x16b3   :  { %v2188_v61 = vsub.f32 %v2183_v34, %v2187_v60 }
0x16b4   :  { %v3114_v11 = vpop.permute.xlu1 %3113 }
0x16b5   :  { %v2189_v2 = vmul.f32 %v2188_v61, %v2188_v61 }
0x16b7   :  { %v2190_v3 = vsel %vm1114_vm6, %v2189_v2, 0.0 }
0x1715   :  { %v2862_v16 = vpop.xlane.xlu0 %2861 }
0x1716   :  { %5222 = vrcp.f32 %v2862_v16 }
0x1719   :  { %v2869_v42 = vpop.permute.xlu0 %2868 }
0x171a   :  { %5011 = vmatpush3.msk.msra.mxu1 %vm228_vm4, %v2869_v42 }
0x171b   :  { %5020 = vmatprep.subr.mxu1 %v5258_v4 }
0x1720   :  { %v5223_v47 = vpop.eup %5222 }
0x1721   :  { %v2864_v8 = vmul.f32 %v5223_v47, %v5221_v44 }
0x1723   :  { %v2867_v49 = vmul.f32 %v5791_v31, %v2864_v8 }
0x1725   :  { %5013 = vmatmul.mubr.msk.f32.vlgmr.msra.gmra.mrb[36].mxu1 %vm224_vm5, %v2867_v49 }
0x1726   :  { %5021 = vmatpush3.xpose.msk.msra.mxu1 %vm132_vm2, %v3022_v48  ;;  %5022 = vmatprep.mubr.msk.f32.mxu1 %vm5257_vm0, %v5258_v4 }
0x1727   :  { %5030 = vmatprep.subr.mxu1 %v5258_v4 }
0x1729   :  { %5023 = vmatmul.mubr.msk.f32.vlgmr.msra.gmra.mrb[38].mxu1 %vm132_vm2, %v3020_v50 }
0x172a   :  { %5032 = vmatprep.mubr.msk.f32.mxu1 %vm5257_vm0, %v5258_v4 }
0x17f8   :  { %v2941_v52 = vpop.f32.mrb[36].mxu1 }
0x17f9   :  { %v5014_v53 = vpop.f32.mrb[37].mxu1  ;;  %5018 = vmatmul.mubr.msk.f32.vlgmr.msra.gmra.mrb[32].mxu0 %vm132_vm2, %v2941_v52 }
0x17fa   :  { %5026 = vmatpush3.msk.msra.mxu0 %vm228_vm4, %v3114_v11  ;;  %5027 = vmatprep.mubr.msk.f32.mxu0 %vm5257_vm0, %v5258_v4 }
0x17fb   :  { %5146 = vmatprep.subr.bf16.mxu0 %v5256_v0 }
0x17fc   :  { %v3093_v54 = vpop.f32.mrb[38].mxu1 }
0x17fd   :  { %v3097_v55 = vmul.f32 0.35355338, %v3093_v54  ;;  %v5024_v56 = vpop.f32.mrb[39].mxu1 }
0x17ff   :  { %v3098_v32 = vsel %vm208_vm3, %v3097_v55, -inf }
0x1800   :  { %3099 = vmax.xlane.f32.xlu0 %v3098_v32 }
0x188d   :  { %v3100_v57 = vpop.xlane.xlu0 %3099 }
0x188e   :  { %v3101_v58 = vsub.f32 %v3097_v55, %v3100_v57 }
0x1890   :  { %v3102_v5 = vmul.f32 1.442695, %v3101_v58 }
0x1892   :  { %5224 = vpow2.f32 %v3102_v5 }
0x189c   :  { %v5225_v62 = vpop.eup %5224 }
0x189d   :  { %v3104_v63 = vsel %vm208_vm3, %v5225_v62, 0.0 }
0x189e   :  { %3105 = vadd.xlane.f32.xlu0 %v3104_v63 }
0x18a2   :  { %2191 = vadd.xlane.f32.xlu0 %v2190_v3 }
0x18cc   :  { %v3014_v6 = vpop.f32.mrb[32].mxu0 }
0x18cd   :  { %v3018_v12 = vadd.f32 %v3014_v6, %v5763_v45  ;;  %v5019_v13 = vpop.f32.mrb[33].mxu0 }
0x192b   :  { %v3106_v14 = vpop.xlane.xlu0 %3105 }
0x192c   :  { %5226 = vrcp.f32 %v3106_v14 }
0x192f   :  { %v2192_v17 = vpop.xlane.xlu0 %2191 }
0x1930   :  { %v2193_v18 = vmul.f32 0.03125, %v2192_v17 }
0x1932   :  { %v2194_v7 = vadd.f32 1e-05, %v2193_v18 }
0x1934   :  { %5228 = vrsqrt.f32 %v2194_v7 }
0x1936   :  { %v5227_v19 = vpop.eup %5226 }
0x1937   :  { %v3108_v37 = vmul.f32 %v5227_v19, %v5225_v62 }
0x1939   :  { %v5817_v22 = vmul.f32 %v5814_v20, %v3108_v37 }
0x193b   :  { %5028 = vmatmul.mubr.msk.f32.vlgmr.msra.gmra.mrb[34].mxu0 %vm224_vm5, %v5817_v22 }
0x193c   :  { %5148 = vmatpush3.bf16.msra.mxu0 %v5639_v21  ;;  %5043 = vmatprep.mubr.msk.f32.mxu0 %vm5257_vm0, %v5258_v4  ;;  %v5838_v21 = vld [vmem:[%s6023_s3 + $0x38] sm:$0xff] }
0x193d   :  { %5149 = vmatprep.subr.bf16.mxu0 %v5256_v0  ;;  %5031 = vmatpush3.msra.mxu1 %v5838_v21 }
0x193e   :  { %v5229_v41 = vpop.eup %5228  ;;  %5046 = vmatprep.subr.mxu1 %v5258_v4 }
0x193f   :  { %v2196_v23 = vmul.f32 %v5229_v41, %v2188_v61 }
0x1940   :  { %5151 = vmatpush3.bf16.msra.mxu0 %v5656_v9 }
0x1941   :  { %v2197_v45 = vmul.f32 %v5651_v24, %v2196_v23  ;;  %5056 = vmatprep.subr.mxu0 %v5258_v4 }
0x1943   :  { %v5829_v25 = vadd.f32 %v5665_v28, %v2197_v45 }
0x1945   :  { %5044 = vmatmul.mubr.msk.f32.vlgmr.msra.gmra.mrb[36].mxu0 %vm55_vm1, %v5829_v25 }
0x1946   :  { %5058 = vmatprep.mubr.msk.f32.mxu0 %vm5257_vm0, %v5258_v4 }
0x1a0e   :  { %v3186_v24 = vpop.f32.mrb[34].mxu0 }
0x1a0f   :  { %v5029_v9 = vpop.f32.mrb[35].mxu0  ;;  %5033 = vmatmul.mubr.msk.f32.vlgmr.msra.gmra.mrb[40].mxu1 %vm132_vm2, %v3186_v24 }
0x1a10   :  { %5048 = vmatprep.mubr.msk.f32.mxu1 %vm5257_vm0, %v5258_v4 }
0x1a18   :  { %v5845_v28 = vpop.f32.mrb[36].mxu0 }
0x1a19   :  { %3541 = vrot.lane.b32.xlu1 %v5845_v28, %s5261_s20  ;;  %3373 = vrot.lane.b32.xlu0 %v5845_v28, %s5260_s19  ;;  %v5045_v26 = vpop.f32.mrb[37].mxu0 }
0x1a1d   :  { %3539 = vrot.lane.b32.xlu1 %v5845_v28, %s5259_s18 }
0x1a8b   :  { %v3542_v27 = vpop.permute.xlu1 %3541  ;;  %v3374_v29 = vpop.permute.xlu0 %3373 }
0x1a8c   :  { %5047 = vmatpush3.xpose.msk.msra.mxu1 %vm132_vm2, %v3374_v29  ;;  %5057 = vmatpush3.xpose.msk.msra.mxu0 %vm132_vm2, %v3542_v27 }
0x1a8d   :  { %5051 = vmatprep.subr.mxu1 %v5258_v4  ;;  %5066 = vmatprep.subr.mxu0 %v5258_v4 }
0x1a8f   :  { %v3540_v30 = vpop.permute.xlu1 %3539  ;;  %5049 = vmatmul.mubr.msk.f32.vlgmr.msra.gmra.mrb[42].mxu1 %vm132_vm2, %v5845_v28 }
0x1a90   :  { %5059 = vmatmul.mubr.msk.f32.vlgmr.msra.gmra.mrb[38].mxu0 %vm132_vm2, %v3540_v30  ;;  %5053 = vmatprep.mubr.msk.f32.mxu1 %vm5257_vm0, %v5258_v4 }
0x1a91   :  { %5067 = vmatpush3.msra.mxu0 %v5719_v59  ;;  %5068 = vmatprep.mubr.msk.f32.mxu0 %vm5257_vm0, %v5258_v4 }
0x1a92   :  { %5076 = vmatprep.subr.mxu0 %v5258_v4 }
0x1ae2   :  { %v3259_v34 = vpop.f32.mrb[40].mxu1 }
0x1ae3   :  { %v3263_v35 = vadd.f32 %v3259_v34, %v3018_v12  ;;  %v5034_v39 = vpop.f32.mrb[41].mxu1 }
0x1ae5   :  { %v5872_v40 = vadd.f32 %v5869_v33, %v3263_v35 }
0x1ae7   :  { %4358 = vst.msk [vmem:[%s6029_s13] sm:$0x7f] %vm1114_vm6, %v5872_v40 }
0x1b62   :  { %v3445_v59 = vpop.f32.mrb[42].mxu1 }
0x1b63   :  { %v3449_v43 = vmul.f32 0.35355338, %v3445_v59  ;;  %v5050_v44 = vpop.f32.mrb[43].mxu1  ;;  %v3613_v46 = vpop.f32.mrb[38].mxu0 }
0x1b64   :  { %v3617_v16 = vmul.f32 0.35355338, %v3613_v46  ;;  %v5060_v42 = vpop.f32.mrb[39].mxu0 }
0x1b65   :  { %v3450_v47 = vsel %vm208_vm3, %v3449_v43, -inf }
0x1b66   :  { %3451 = vmax.xlane.f32.xlu0 %v3450_v47  ;;  %v3618_v8 = vsel %vm208_vm3, %v3617_v16, -inf }
0x1b67   :  { %3619 = vmax.xlane.f32.xlu1 %v3618_v8 }
0x1b78   :  { %3462 = vrot.lane.b32.xlu1 %v5845_v28, %s5263_s22 }
0x1b7c   :  { %3855 = vrot.lane.b32.xlu1 %v5845_v28, %s5264_s23 }
0x1b80   :  { %3853 = vrot.lane.b32.xlu1 %v5845_v28, %s5265_s24 }
0x1bf3   :  { %v3452_v48 = vpop.xlane.xlu0 %3451 }
0x1bf4   :  { %v3453_v49 = vsub.f32 %v3449_v43, %v3452_v48  ;;  %v3620_v50 = vpop.xlane.xlu1 %3619 }
0x1bf5   :  { %v3621_v51 = vsub.f32 %v3617_v16, %v3620_v50 }
0x1bf6   :  { %v3454_v52 = vmul.f32 1.442695, %v3453_v49 }
0x1bf7   :  { %v3622_v11 = vmul.f32 1.442695, %v3621_v51 }
0x1bf8   :  { %5230 = vpow2.f32 %v3454_v52  ;;  %v3463_v53 = vpop.permute.xlu1 %3462 }
0x1bf9   :  { %5052 = vmatpush3.msk.msra.mxu1 %vm228_vm4, %v3463_v53  ;;  %5232 = vpow2.f32 %v3622_v11 }
0x1bfa   :  { %5061 = vmatprep.subr.mxu1 %v5258_v4 }
0x1bfc   :  { %v3856_v12 = vpop.permute.xlu1 %3855 }
0x1c02   :  { %v5231_v54 = vpop.eup %5230 }
0x1c03   :  { %v3456_v55 = vsel %vm208_vm3, %v5231_v54, 0.0  ;;  %v5233_v56 = vpop.eup %5232 }
0x1c04   :  { %3457 = vadd.xlane.f32.xlu0 %v3456_v55  ;;  %v3624_v32 = vsel %vm208_vm3, %v5233_v56, 0.0 }
0x1c08   :  { %3625 = vadd.xlane.f32.xlu0 %v3624_v32 }
0x1c1e   :  { %3630 = vrot.lane.b32.xlu0 %v5845_v28, %s5262_s21 }
0x1c91   :  { %v3458_v57 = vpop.xlane.xlu0 %3457 }
0x1c92   :  { %5234 = vrcp.f32 %v3458_v57 }
0x1c95   :  { %v3626_v58 = vpop.xlane.xlu0 %3625 }
0x1c96   :  { %5236 = vrcp.f32 %v3626_v58 }
0x1c99   :  { %v3631_v2 = vpop.permute.xlu0 %3630 }
0x1c9c   :  { %v5235_v5 = vpop.eup %5234 }
0x1c9d   :  { %v3460_v60 = vmul.f32 %v5235_v5, %v5231_v54 }
0x1c9f   :  { %v3461_v61 = vmul.f32 %v5728_v1, %v3460_v60 }
0x1ca0   :  { %v5237_v62 = vpop.eup %5236 }
0x1ca1   :  { %v3628_v63 = vmul.f32 %v5237_v62, %v5233_v56  ;;  %5054 = vmatmul.mubr.msk.f32.vlgmr.msra.gmra.mrb[44].mxu1 %vm224_vm5, %v3461_v61 }
0x1ca2   :  { %5062 = vmatpush3.msk.msra.mxu1 %vm228_vm4, %v3631_v2  ;;  %5063 = vmatprep.mubr.msk.f32.mxu1 %vm5257_vm0, %v5258_v4 }
0x1ca3   :  { %v3629_v3 = vmul.f32 %v5734_v10, %v3628_v63  ;;  %5071 = vmatprep.subr.mxu1 %v5258_v4 }
0x1ca5   :  { %5064 = vmatmul.mubr.msk.f32.vlgmr.msra.gmra.mrb[46].mxu1 %vm224_vm5, %v3629_v3 }
0x1ca6   :  { %5072 = vmatpush3.msra.mxu1 %v5748_v15  ;;  %5073 = vmatprep.mubr.msk.f32.mxu1 %vm5257_vm0, %v5258_v4  ;;  %v3854_v15 = vpop.permute.xlu1 %3853 }
0x1ca7   :  { %5081 = vmatprep.subr.mxu1 %v5258_v4 }
0x1d74   :  { %v3535_v1 = vpop.f32.mrb[44].mxu1 }
0x1d75   :  { %v5055_v6 = vpop.f32.mrb[45].mxu1  ;;  %5074 = vmatmul.mubr.msk.f32.vlgmr.msra.gmra.mrb[48].mxu1 %vm132_vm2, %v3535_v1 }
0x1d76   :  { %5083 = vmatprep.mubr.msk.f32.mxu1 %vm5257_vm0, %v5258_v4 }
0x1d78   :  { %v3703_v10 = vpop.f32.mrb[46].mxu1 }
0x1d79   :  { %v5065_v13 = vpop.f32.mrb[47].mxu1  ;;  %5069 = vmatmul.mubr.msk.f32.vlgmr.msra.gmra.mrb[40].mxu0 %vm132_vm2, %v3703_v10 }
0x1d7a   :  { %5077 = vmatpush3.xpose.msk.msra.mxu0 %vm132_vm2, %v3856_v12  ;;  %5078 = vmatprep.mubr.msk.f32.mxu0 %vm5257_vm0, %v5258_v4  ;;  %v4361_v12 = vld [vmem:[%s6030_s7] sm:$0xff]  ;;  %v4364_v13 = vld [vmem:[%s6030_s7 + $0x18] sm:$0xff] }
0x1d7b   :  { %5086 = vmatprep.subr.mxu0 %v5258_v4 }
0x1d7d   :  { %5079 = vmatmul.mubr.msk.f32.vlgmr.msra.gmra.mrb[42].mxu0 %vm132_vm2, %v3854_v15 }
0x1d7e   :  { %5087 = vmatpush3.msra.mxu0 %v5782_v38  ;;  %5088 = vmatprep.mubr.msk.f32.mxu0 %vm5257_vm0, %v5258_v4 }
0x1d7f   :  { %5096 = vmatprep.subr.mxu0 %v5258_v4 }
0x1e48   :  { %v3849_v14 = vpop.f32.mrb[48].mxu1 }
0x1e49   :  { %v5075_v17 = vpop.f32.mrb[49].mxu1 }
0x1e4c   :  { %v3776_v18 = vpop.f32.mrb[40].mxu0 }
0x1e4d   :  { %v3850_v7 = vadd.f32 %v3849_v14, %v3776_v18  ;;  %v5070_v19 = vpop.f32.mrb[41].mxu0 }
0x1e50   :  { %v3927_v37 = vpop.f32.mrb[42].mxu0 }
0x1e51   :  { %v3931_v41 = vmul.f32 0.35355338, %v3927_v37  ;;  %v5080_v23 = vpop.f32.mrb[43].mxu0 }
0x1e53   :  { %v3932_v45 = vsel %vm208_vm3, %v3931_v41, -inf }
0x1e54   :  { %3933 = vmax.xlane.f32.xlu0 %v3932_v45 }
0x1e6a   :  { %3944 = vrot.lane.b32.xlu0 %v5845_v28, %s6040_s29 }
0x1e6e   :  { %4095 = vrot.lane.b32.xlu0 %v5845_v28, %s5267_s17 }
0x1ee1   :  { %v3934_v38 = vpop.xlane.xlu0 %3933 }
0x1ee2   :  { %v3935_v24 = vsub.f32 %v3931_v41, %v3934_v38  ;;  %v4665_v38 = vld [vmem:[%s6026_s5 + $0x1] ss:$0 sm:$0xff] }
0x1ee4   :  { %v3936_v9 = vmul.f32 1.442695, %v3935_v24 }
0x1ee5   :  { %v3945_v26 = vpop.permute.xlu0 %3944 }
0x1ee6   :  { %5238 = vpow2.f32 %v3936_v9  ;;  %5082 = vmatpush3.msk.msra.mxu1 %vm228_vm4, %v3945_v26 }
0x1ee7   :  { %5091 = vmatprep.subr.mxu1 %v5258_v4 }
0x1ee9   :  { %v4096_v43 = vpop.permute.xlu0 %4095 }
0x1ef0   :  { %v5239_v27 = vpop.eup %5238 }
0x1ef1   :  { %v3938_v29 = vsel %vm208_vm3, %v5239_v27, 0.0 }
0x1ef2   :  { %3939 = vadd.xlane.f32.xlu1 %v3938_v29 }
0x1f03   :  { %4097 = vrot.lane.b32.xlu1 %v5845_v28, %s5266_s16 }
0x1f7f   :  { %v3940_v30 = vpop.xlane.xlu1 %3939 }
0x1f80   :  { %5240 = vrcp.f32 %v3940_v30 }
0x1f83   :  { %v4098_v59 = vpop.permute.xlu1 %4097 }
0x1f8a   :  { %v5241_v34 = vpop.eup %5240 }
0x1f8b   :  { %v3942_v35 = vmul.f32 %v5241_v34, %v5239_v27 }
0x1f8d   :  { %v3943_v39 = vmul.f32 %v5791_v31, %v3942_v35 }
0x1f8f   :  { %5084 = vmatmul.mubr.msk.f32.vlgmr.msra.gmra.mrb[50].mxu1 %vm224_vm5, %v3943_v39 }
0x1f90   :  { %5092 = vmatpush3.xpose.msk.msra.mxu1 %vm132_vm2, %v4098_v59  ;;  %5093 = vmatprep.mubr.msk.f32.mxu1 %vm5257_vm0, %v5258_v4 }
0x1f91   :  { %5101 = vmatprep.subr.mxu1 %v5258_v4 }
0x1f93   :  { %5094 = vmatmul.mubr.msk.f32.vlgmr.msra.gmra.mrb[52].mxu1 %vm132_vm2, %v4096_v43  ;;  %v4690_v43 = vld [vmem:[%s6031_s8] ss:$0 sm:$0xff] }
0x1f94   :  { %5102 = vmatpush3.msra.mxu1 %v5838_v21  ;;  %5103 = vmatprep.mubr.msk.f32.mxu1 %vm5257_vm0, %v5258_v4  ;;  %v3271_v21 = vadd.f32 %v5872_v40, %v5673_v36 }
0x1f95   :  { %5158 = vmatprep.subr.bf16.mxu1 %v5256_v0 }
0x1f96   :  { %v3272_v8 = vsel %vm1114_vm6, %v3271_v21, 0.0 }
0x2062   :  { %v4017_v31 = vpop.f32.mrb[50].mxu1 }
0x2063   :  { %v5085_v44 = vpop.f32.mrb[51].mxu1  ;;  %5089 = vmatmul.mubr.msk.f32.vlgmr.msra.gmra.mrb[44].mxu0 %vm132_vm2, %v4017_v31 }
0x2064   :  { %5098 = vmatprep.mubr.msk.f32.mxu0 %vm5257_vm0, %v5258_v4 }
0x2066   :  { %v4169_v46 = vpop.f32.mrb[52].mxu1 }
0x2067   :  { %v4173_v16 = vmul.f32 0.35355338, %v4169_v46  ;;  %v5095_v42 = vpop.f32.mrb[53].mxu1 }
0x2069   :  { %v4174_v47 = vsel %vm208_vm3, %v4173_v16, -inf }
0x206a   :  { %4175 = vmax.xlane.f32.xlu1 %v4174_v47 }
0x206e   :  { %3273 = vadd.xlane.f32.xlu1 %v3272_v8 }
0x20f7   :  { %v4176_v48 = vpop.xlane.xlu1 %4175 }
0x20f8   :  { %v4177_v49 = vsub.f32 %v4173_v16, %v4176_v48  ;;  %v5254_v16 = vld [vmem:[%s6022_s0] sm:$0x7f] }
0x20fa   :  { %v4178_v50 = vmul.f32 1.442695, %v4177_v49 }
0x20fc   :  { %5242 = vpow2.f32 %v4178_v50 }
0x2106   :  { %v5243_v51 = vpop.eup %5242 }
0x2107   :  { %v4180_v52 = vsel %vm208_vm3, %v5243_v51, 0.0 }
0x2108   :  { %4181 = vadd.xlane.f32.xlu0 %v4180_v52 }
0x211e   :  { %4187 = vrot.lane.b32.xlu0 %v5845_v28, %s6039_s28 }
0x2136   :  { %v4090_v11 = vpop.f32.mrb[44].mxu0 }
0x2137   :  { %v4094_v53 = vadd.f32 %v4090_v11, %v3850_v7  ;;  %v5090_v54 = vpop.f32.mrb[45].mxu0 }
0x2195   :  { %v4182_v55 = vpop.xlane.xlu0 %4181 }
0x2196   :  { %5244 = vrcp.f32 %v4182_v55 }
0x2199   :  { %v4188_v36 = vpop.permute.xlu0 %4187 }
0x219a   :  { %5097 = vmatpush3.msk.msra.mxu0 %vm228_vm4, %v4188_v36 }
0x219b   :  { %5152 = vmatprep.subr.bf16.mxu0 %v5256_v0 }
0x21a0   :  { %v5245_v40 = vpop.eup %5244 }
0x21a1   :  { %v4184_v56 = vmul.f32 %v5245_v40, %v5243_v51  ;;  %v5255_v51 = vld [vmem:[%s6022_s0 + $0x8] sm:$0x7f] }
0x21a3   :  { %v4185_v32 = vmul.f32 %v5814_v20, %v4184_v56  ;;  %v3274_v20 = vpop.xlane.xlu1 %3273 }
0x21a5   :  { %v4186_v57 = vadd.f32 %v4185_v32, %v5817_v22  ;;  %5099 = vmatmul.mubr.msk.f32.vlgmr.msra.gmra.mrb[46].mxu0 %vm224_vm5, %v4185_v32  ;;  %v3275_v22 = vmul.f32 0.03125, %v3274_v20 }
0x21a6   :  { %5114 = vmatprep.mubr.msk.f32.mxu0 %vm5257_vm0, %v5258_v4 }
0x21a7   :  { %v4355_v28 = vmul.f32 0.5, %v4186_v57  ;;  %v3276_v63 = vsub.f32 %v3271_v21, %v3275_v22  ;;  %v4692_v22 = vld [vmem:[%s6032_s9] ss:$0 sm:$0xff] }
0x21a9   :  { %4688 = vst.msk [vmem:[%s6028_s12 + $0x8] sm:$0x7f] %vm208_vm3, %v4355_v28  ;;  %v3277_v6 = vmul.f32 %v3276_v63, %v3276_v63 }
0x2278   :  { %v4260_v58 = vpop.f32.mrb[46].mxu0 }
0x2279   :  { %v5100_v5 = vpop.f32.mrb[47].mxu0  ;;  %5104 = vmatmul.mubr.msk.f32.vlgmr.msra.gmra.mrb[54].mxu1 %vm132_vm2, %v4260_v58 }
0x227a   :  { %5125 = vmatprep.mubr.msk.f32.mxu1 %vm5257_vm0, %v5258_v4  ;;  %v3278_v4 = vsel %vm1114_vm6, %v3277_v6, 0.0 }
0x234c   :  { %v4333_v60 = vpop.f32.mrb[54].mxu1 }
0x234d   :  { %v4337_v61 = vadd.f32 %v4333_v60, %v4094_v53  ;;  %v5105_v62 = vpop.f32.mrb[55].mxu1 }
0x234f   :  { %v4338_v2 = vadd.f32 %v5869_v33, %v4337_v61  ;;  %v4362_v33 = vld [vmem:[%s6030_s7 + $0x8] sm:$0xff]  ;;  %v4693_v61 = vld [vmem:[%s6033_s10] ss:$0 sm:$0xff] }
0x2350   :  { %v5153_v10 = vpack.c.bf16 %v4362_v33, %v4361_v12 }
0x2351   :  { %4689 = vst.msk [vmem:[%s6029_s13 + $0x8] sm:$0x7f] %vm1114_vm6, %v4338_v2  ;;  %v4339_v3 = vadd.f32 %v4338_v2, %v5829_v25  ;;  %v4363_v25 = vld [vmem:[%s6030_s7 + $0x10] sm:$0xff] }
0x2352   :  { %5154 = vmatpush3.bf16.msra.mxu0 %v5153_v10  ;;  %5160 = vmatpush3.bf16.msra.mxu1 %v5153_v10  ;;  %v5156_v15 = vpack.c.bf16 %v4364_v13, %v4363_v25 }
0x2353   :  { %v4340_v1 = vsel %vm1114_vm6, %v4339_v3, 0.0  ;;  %5155 = vmatprep.subr.bf16.mxu0 %v5256_v0  ;;  %5161 = vmatprep.subr.bf16.mxu1 %v5256_v0  ;;  %v4666_v0 = vld [vmem:[%s6027_s6 + $0x1] ss:$0 sm:$0xff] }
0x2354   :  { %4341 = vadd.xlane.f32.xlu1 %v4340_v1 }
0x2356   :  { %5157 = vmatpush3.bf16.msra.mxu0 %v5156_v15  ;;  %5163 = vmatpush3.bf16.msra.mxu1 %v5156_v15 }
0x2358   :  { %3279 = vadd.xlane.f32.xlu1 %v3278_v4 }
0x23e1   :  { %v4342_v14 = vpop.xlane.xlu1 %4341 }
0x23e2   :  { %v4343_v17 = vmul.f32 0.03125, %v4342_v14 }
0x23e4   :  { %v4344_v18 = vsub.f32 %v4339_v3, %v4343_v17 }
0x23e5   :  { %v3280_v7 = vpop.xlane.xlu1 %3279 }
0x23e6   :  { %v3281_v19 = vmul.f32 0.03125, %v3280_v7  ;;  %v4345_v37 = vmul.f32 %v4344_v18, %v4344_v18 }
0x23e8   :  { %v3282_v41 = vadd.f32 1e-05, %v3281_v19  ;;  %v4346_v23 = vsel %vm1114_vm6, %v4345_v37, 0.0 }
0x23e9   :  { %4347 = vadd.xlane.f32.xlu1 %v4346_v23 }
0x23ea   :  { %5246 = vrsqrt.f32 %v3282_v41 }
0x23f4   :  { %v5247_v45 = vpop.eup %5246 }
0x23f5   :  { %v3284_v24 = vmul.f32 %v5247_v45, %v3276_v63 }
0x23f7   :  { %v3291_v9 = vmul.f32 %v4665_v38, %v3284_v24 }
0x23f9   :  { %v3298_v26 = vadd.f32 %v4666_v0, %v3291_v9 }
0x23fb   :  { %5115 = vmatmul.mubr.msk.f32.vlgmr.msra.gmra.mrb[48].mxu0 %vm55_vm1, %v3298_v26 }
0x2476   :  { %v4348_v27 = vpop.xlane.xlu1 %4347 }
0x2477   :  { %v4349_v29 = vmul.f32 0.03125, %v4348_v27 }
0x2479   :  { %v4350_v30 = vadd.f32 1e-05, %v4349_v29 }
0x247b   :  { %5248 = vrsqrt.f32 %v4350_v30 }
0x2485   :  { %v5249_v34 = vpop.eup %5248 }
0x2486   :  { %v4352_v35 = vmul.f32 %v5249_v34, %v4344_v18 }
0x2488   :  { %v4353_v39 = vmul.f32 %v4665_v38, %v4352_v35 }
0x248a   :  { %v4354_v59 = vadd.f32 %v4666_v0, %v4353_v39 }
0x248c   :  { %5126 = vmatmul.mubr.msk.f32.vlgmr.msra.gmra.mrb[56].mxu1 %vm55_vm1, %v4354_v59 }
0x24ce   :  { %v4443_v31 = vpop.f32.mrb[48].mxu0 }
0x24cf   :  { %v4444_v44 = vadd.f32 %v4690_v43, %v4443_v31  ;;  %v5116_v46 = vpop.f32.mrb[49].mxu0 }
0x24d1   :  { %v4447_v42 = vadd.f32 %v5254_v16, %v4444_v44 }
0x24d3   :  { %v4448_v47 = vsel %vm1114_vm6, %v4447_v42, 0.0 }
0x24d4   :  { %4449 = vadd.xlane.f32.xlu1 %v4448_v47 }
0x255f   :  { %v4544_v21 = vpop.f32.mrb[56].mxu1 }
0x2560   :  { %v4545_v8 = vadd.f32 %v4690_v43, %v4544_v21  ;;  %v5127_v48 = vpop.f32.mrb[57].mxu1 }
0x2561   :  { %v4450_v49 = vpop.xlane.xlu1 %4449 }
0x2562   :  { %v4451_v50 = vmul.f32 0.03125, %v4450_v49  ;;  %v4548_v52 = vadd.f32 %v5255_v51, %v4545_v8 }
0x2564   :  { %v4452_v11 = vsub.f32 %v4447_v42, %v4451_v50  ;;  %v4549_v53 = vsel %vm1114_vm6, %v4548_v52, 0.0 }
0x2565   :  { %4550 = vadd.xlane.f32.xlu1 %v4549_v53 }
0x2566   :  { %v4453_v54 = vmul.f32 %v4452_v11, %v4452_v11 }
0x2568   :  { %v4454_v55 = vsel %vm1114_vm6, %v4453_v54, 0.0 }
0x2569   :  { %4455 = vadd.xlane.f32.xlu0 %v4454_v55 }
0x25f2   :  { %v4551_v36 = vpop.xlane.xlu1 %4550 }
0x25f3   :  { %v4552_v40 = vmul.f32 0.03125, %v4551_v36 }
0x25f5   :  { %v4553_v56 = vsub.f32 %v4548_v52, %v4552_v40 }
0x25f6   :  { %v4456_v32 = vpop.xlane.xlu0 %4455 }
0x25f7   :  { %v4457_v57 = vmul.f32 0.03125, %v4456_v32  ;;  %v4554_v28 = vmul.f32 %v4553_v56, %v4553_v56 }
0x25f9   :  { %v4458_v58 = vadd.f32 1e-05, %v4457_v57  ;;  %v4555_v5 = vsel %vm1114_vm6, %v4554_v28, 0.0 }
0x25fa   :  { %4556 = vadd.xlane.f32.xlu1 %v4555_v5 }
0x25fb   :  { %5250 = vrsqrt.f32 %v4458_v58 }
0x2605   :  { %v5251_v20 = vpop.eup %5250 }
0x2606   :  { %v4460_v60 = vmul.f32 %v5251_v20, %v4452_v11 }
0x2608   :  { %v4467_v62 = vmul.f32 %v4692_v22, %v4460_v60 }
0x260a   :  { %v4474_v63 = vadd.f32 %v4693_v61, %v4467_v62 }
0x260c   :  { %4564 = vst.msk [vmem:[%s6034_s11] sm:$0x7f] %vm1114_vm6, %v4474_v63 }
0x2687   :  { %v4557_v2 = vpop.xlane.xlu1 %4556 }
0x2688   :  { %v4558_v3 = vmul.f32 0.03125, %v4557_v2 }
0x268a   :  { %v4559_v1 = vadd.f32 1e-05, %v4558_v3 }
0x268c   :  { %5252 = vrsqrt.f32 %v4559_v1 }
0x2696   :  { %v5253_v6 = vpop.eup %5252 }
0x2697   :  { %v4561_v4 = vmul.f32 %v5253_v6, %v4553_v56 }
0x2699   :  { %v4562_v12 = vmul.f32 %v4692_v22, %v4561_v4 }
0x269b   :  { %v4563_v33 = vadd.f32 %v4693_v61, %v4562_v12 }
0x269d   :  { %4695 = vst.msk [vmem:[%s6034_s11 + $0x8] sm:$0x7f] %vm1114_vm6, %v4563_v33 }

</bundles_post_ra>
